<compile_context>
chip_gen: v6e
topology: v6e:2x2x1
jax: 0.10.0
libtpu: 0.0.40
codegen_flags: <defaults>
</compile_context>

<pallas_src>
import functools

import jax
import jax.numpy as jnp
from jax import lax
from jax.experimental import pallas as pl
from jax.experimental.pallas import tpu as pltpu


def _self_attn_kernel(x_full_ref, x_q_ref, v_ref, at_ref, kb_ref, gamma_ref,
                      out_ref, *attn_refs, pv_dtype):
    """One (batch, query-tile) grid step.

    x_full_ref: (1, C, N)   keys (full spatial extent)
    x_q_ref:    (1, C, TQ)  query columns (also the residual slice)
    v_ref:      (1, C, N)   precomputed value projection Wv x + bv (pv_dtype)
    at_ref:     (C, C)      Wk^T Wq
    kb_ref:     (1, C)      Wk^T bq (per-key bias row)
    gamma_ref:  (1,) SMEM   residual scale
    out_ref:    (1, C, TQ)
    attn_refs:  optionally ((1, TQ, N),) attention writeback
    """
    x_full = x_full_ref[0]                                # (C, N)
    x_q = x_q_ref[0]                                      # (C, TQ)

    # energy[t, j] = x_q[:, t]^T (Wq^T Wk) x_full[:, j] + (Wk^T bq) . x_full[:, j]
    # (row-constant bias terms cancel in the row-wise softmax and are omitted)
    tmid = jnp.dot(at_ref[...], x_q, preferred_element_type=jnp.float32)     # (C, TQ)
    energy = lax.dot_general(tmid, x_full, (((0,), (0,)), ((), ())),
                             preferred_element_type=jnp.float32)             # (TQ, N)
    energy = energy + jnp.dot(kb_ref[...], x_full,
                              preferred_element_type=jnp.float32)            # (1, N) bcast

    # numerically stable row-wise softmax; reciprocal on the EUP + 1 Newton step
    m = jnp.max(energy, axis=-1, keepdims=True)
    e = jnp.exp(energy - m)
    s = jnp.sum(e, axis=-1, keepdims=True)
    r = pl.reciprocal(s, approx=True)
    r = r * (2.0 - s * r)                                  # Newton refinement
    attn = e * r                                           # (TQ, N)

    if attn_refs:
        attn_refs[0][0] = attn.astype(attn_refs[0].dtype)

    # out[c, t] = sum_j V[c, j] * attn[t, j].  Contract over N with V as the RHS
    # so the implied MXU transpose hits the small (C, N) operand, not the big
    # (TQ, N) attention tile; only the tiny (TQ, C) result is transposed back.
    o_t = lax.dot_general(attn.astype(pv_dtype), v_ref[0],
                          (((1,), (1,)), ((), ())),
                          preferred_element_type=jnp.float32)                # (TQ, C)

    gamma = gamma_ref[0]                                   # scalar from SMEM
    out_ref[0] = (gamma * o_t.T + x_q).astype(out_ref.dtype)


def _vmem_capacity_bytes():
    """Physical VMEM per TensorCore; conservative 64 MiB (v7x) fallback."""
    try:
        info = pltpu.get_tpu_info()
        cap = int(getattr(info, "vmem_capacity_bytes", 0) or 0)
        if cap > 0:
            return cap
    except Exception:
        pass
    return 64 * 1024 * 1024


def _pick_query_tile(n, cap, fits):
    """Largest legal query tile (tq == n, or a multiple of 128) within budget."""
    if n <= 128:
        return n
    cands = list(range(128, min(cap, n) + 1, 128))
    if n <= cap:
        cands.append(n)
    for t in sorted(set(cands), reverse=True):
        if fits(t):
            return t
    return 128                       # smallest legal tile; estimate is conservative


def self_attn_spatial(x, wq, bq, wk, bk, wv, bv, gamma, *,
                      pv_dtype=jnp.bfloat16,
                      attn_dtype=jnp.float32,
                      return_attention=True,
                      tq=None,
                      tq_cap=2048):
    """x: (B, C, W, H) NCHW.  Returns (out (B,C,W,H), attention (B,N,N) or None).

    pv_dtype:  dtype of the attn @ V matmul operands (accumulation stays f32).
               bf16 (default) is MXU-native on v5e/v6e/v7x; ~1e-3 relative error
               on `out`.  Pass jnp.float32 for reference-exact outputs.
    attn_dtype: dtype of the returned (B, N, N) attention.  float32 matches the
               PyTorch module; bf16 halves the dominant HBM writeback.
    return_attention: if False, the (B, N, N) attention is never materialized.
    tq:        query-tile override (must equal N or be a multiple of 128);
               None = auto from the generation-aware VMEM budget.
    """
    B, C, W, H = x.shape
    N = W * H
    f32 = jnp.float32

    # NCHW -> (B, C, N): a pure reshape, no transpose / extra HBM pass.
    x_cn = x.reshape(B, C, N)

    # Fold the Q/K projections (tiny (C,C) work, done once in the wrapper).
    # bk only contributes row-constant energy terms, which cancel in the softmax.
    at_fold = jnp.dot(wk.astype(f32).T, wq.astype(f32))                # (C, C) = Wk^T Wq
    kb_row = jnp.dot(wk.astype(f32).T, bq.astype(f32)).reshape(1, C)   # Wk^T bq
    gamma_s = gamma.astype(f32).reshape(1)

    # Hoist the value projection out of the per-query-tile loop: one einsum here
    # vs. N/TQ in-kernel recomputations of Wv @ x per batch.
    v_cn = (jnp.einsum('oc,bcn->bon', wv.astype(f32), x_cn.astype(f32))
            + bv.astype(f32)[None, :, None]).astype(pv_dtype)          # (B, C, N)

    # ---- generation-aware VMEM budget and query-tile selection ----
    vmem_cap = _vmem_capacity_bytes()
    # ~48 MiB scoped on v7x (64 MiB physical), ~96 MiB on v5e/v6e (128 MiB).
    vmem_limit = int(min(max(32 * 1024 * 1024, 0.75 * vmem_cap), 112 * 1024 * 1024))
    budget = vmem_limit - 6 * 1024 * 1024      # headroom for Mosaic internal scratch

    x_bytes = jnp.dtype(x.dtype).itemsize
    pv_bytes = jnp.dtype(pv_dtype).itemsize
    attn_bytes = jnp.dtype(attn_dtype).itemsize if return_attention else 0

    fixed = (2 * C * N * x_bytes                 # keys block (double-buffered)
             + 2 * C * N * pv_bytes              # V block (double-buffered)
             + N * max(C, 128) * pv_bytes        # V^T staging for the PV matmul
             + 64 * 1024)                        # weight blocks / misc

    def _tile_bytes(t):
        b = fixed
        b += 2 * C * t * x_bytes                 # query block (double-buffered)
        b += 2 * C * t * x_bytes                 # out block (double-buffered)
        b += 2 * t * N * attn_bytes              # attn block (double-buffered)
        b += 3 * t * N * 4                       # energy / exp / attn f32 temporaries
        b += t * N * pv_bytes                    # pv_dtype attn copy for the MXU
        b += 2 * C * t * 4                       # PV result + its transpose
        return b

    if tq is None:
        tq = _pick_query_tile(N, max(tq_cap, 128), lambda t: _tile_bytes(t) <= budget)
        # v7x has 2 TensorCores per chip: guarantee >= 2 parallel grid points.
        if B == 1 and tq >= N and N > 128:
            half = 128 * (((N + 1) // 2 + 127) // 128)
            tq = max(128, min(half, ((N - 1) // 128) * 128))
    else:
        if tq != N and tq % 128 != 0:
            raise ValueError("tq must equal N or be a multiple of 128")
        tq = min(tq, N)

    n_q = pl.cdiv(N, tq)
    grid = (B, n_q)

    kernel = functools.partial(_self_attn_kernel, pv_dtype=pv_dtype)

    const2 = lambda b, q: (0, 0)
    in_specs = [
        pl.BlockSpec((1, C, N), lambda b, q: (b, 0, 0)),     # x  (keys)
        pl.BlockSpec((1, C, tq), lambda b, q: (b, 0, q)),    # x  (query tile / residual)
        pl.BlockSpec((1, C, N), lambda b, q: (b, 0, 0)),     # V  (precomputed, pv_dtype)
        pl.BlockSpec((C, C), const2),                        # Wk^T Wq
        pl.BlockSpec((1, C), const2),                        # Wk^T bq
        pl.BlockSpec(memory_space=pltpu.MemorySpace.SMEM),   # gamma (scalar)
    ]
    out_shapes = [jax.ShapeDtypeStruct((B, C, N), x.dtype)]
    out_specs = [pl.BlockSpec((1, C, tq), lambda b, q: (b, 0, q))]
    if return_attention:
        out_shapes.append(jax.ShapeDtypeStruct((B, N, N), attn_dtype))
        out_specs.append(pl.BlockSpec((1, tq, N), lambda b, q: (b, q, 0)))

    res = pl.pallas_call(
        kernel,
        out_shape=tuple(out_shapes),
        grid_spec=pltpu.PrefetchScalarGridSpec(
            num_scalar_prefetch=0,
            grid=grid,
            in_specs=in_specs,
            out_specs=out_specs,
        ),
        compiler_params=pltpu.CompilerParams(
            dimension_semantics=("parallel", "parallel"),
            vmem_limit_bytes=vmem_limit),
    )(x_cn, x_cn, v_cn, at_fold, kb_row, gamma_s)

    out = res[0].reshape(B, C, W, H)      # (B, C, N) -> NCHW: again a pure reshape
    attn = res[1] if return_attention else None
    return out, attn


def _reference(x, wq, bq, wk, bk, wv, bv, gamma):
    """Plain-JAX reference mirroring the PyTorch forward exactly."""
    B, C, W, H = x.shape
    N = W * H
    conv1x1 = lambda w, b: (jnp.einsum('bchw,oc->bohw', x, w)
                            + b[None, :, None, None])
    q = conv1x1(wq, bq).reshape(B, -1, N).transpose(0, 2, 1)   # (B, N, Dq)
    k = conv1x1(wk, bk).reshape(B, -1, N)                       # (B, Dq, N)
    energy = jnp.einsum('bnd,bdm->bnm', q, k)
    attn = jax.nn.softmax(energy, axis=-1)
    v = conv1x1(wv, bv).reshape(B, -1, N)                       # (B, C, N)
    out = jnp.einsum('bcn,bmn->bcm', v, attn)                   # V @ attn^T
    return gamma[0] * out.reshape(B, C, W, H) + x, attn


if __name__ == "__main__":
    # small shapes consistent with the module: in_dim=16, out_dim=in_dim//8=2
    # N = 12*12 = 144 also exercises a spatial size that is not a multiple of 128.
    B, C, W, H = 2, 16, 12, 12
    Dq = C // 8
    N = W * H

    key = jax.random.PRNGKey(0)
    k_x, k_wq, k_bq, k_wk, k_bk, k_wv, k_bv, k_g = jax.random.split(key, 8)

    x = jax.random.normal(k_x, (B, C, W, H), dtype=jnp.float32)

    # nn.Conv2d(in, out, 1): weight (out, in), bias (out,)
    wq = 0.1 * jax.random.normal(k_wq, (Dq, C), dtype=jnp.float32)
    bq = 0.1 * jax.random.normal(k_bq, (Dq,), dtype=jnp.float32)
    wk = 0.1 * jax.random.normal(k_wk, (Dq, C), dtype=jnp.float32)
    bk = 0.1 * jax.random.normal(k_bk, (Dq,), dtype=jnp.float32)
    wv = 0.1 * jax.random.normal(k_wv, (C, C), dtype=jnp.float32)
    bv = 0.1 * jax.random.normal(k_bv, (C,), dtype=jnp.float32)
    # torch inits gamma to 0; use a deterministic nonzero value so the residual
    # path is actually exercised.
    gamma = 0.5 * jnp.abs(jax.random.normal(k_g, (1,), dtype=jnp.float32)) + 0.1

    ref_out, ref_attn = _reference(x, wq, bq, wk, bk, wv, bv, gamma)

    # 1) defaults: bf16 PV operands (f32 accumulation), f32 attention output
    out1, attn1 = jax.block_until_ready(
        self_attn_spatial(x, wq, bq, wk, bk, wv, bv, gamma))
    assert out1.shape == (B, C, W, H) and attn1.shape == (B, N, N)
    assert jnp.allclose(attn1, ref_attn, atol=1e-5, rtol=1e-4), \
        float(jnp.max(jnp.abs(attn1 - ref_attn)))
    assert jnp.allclose(out1, ref_out, atol=2e-2, rtol=2e-2), \
        float(jnp.max(jnp.abs(out1 - ref_out)))

    # 2) f32 PV operands: reference-exact path
    out2, attn2 = jax.block_until_ready(
        self_attn_spatial(x, wq, bq, wk, bk, wv, bv, gamma, pv_dtype=jnp.float32))
    assert jnp.allclose(out2, ref_out, atol=1e-4, rtol=1e-4), \
        float(jnp.max(jnp.abs(out2 - ref_out)))
    assert jnp.allclose(attn2, ref_attn, atol=1e-5, rtol=1e-4)

    # 3) forced tq=128 with N=144: exercises the cdiv grid + padded tail query tile
    out3, attn3 = jax.block_until_ready(
        self_attn_spatial(x, wq, bq, wk, bk, wv, bv, gamma,
                          pv_dtype=jnp.float32, tq=128))
    assert jnp.allclose(out3, ref_out, atol=1e-4, rtol=1e-4), \
        float(jnp.max(jnp.abs(out3 - ref_out)))
    assert jnp.allclose(attn3, ref_attn, atol=1e-5, rtol=1e-4)

    # 4) attention output skipped entirely (only `out` materialized)
    out4, attn4 = jax.block_until_ready(
        self_attn_spatial(x, wq, bq, wk, bk, wv, bv, gamma,
                          pv_dtype=jnp.float32, return_attention=False))
    assert attn4 is None
    assert jnp.allclose(out4, ref_out, atol=1e-4, rtol=1e-4)

    print("KERNEL_OK")
</pallas_src>

<mosaic_0001>
module attributes {stable_mosaic.version = 11 : i64} {
  func.func @_self_attn_kernel(%arg0: i32, %arg1: i32, %arg2: memref<1x16x144xf32, #tpu.memory_space<vmem>>, %arg3: memref<1x16x144xf32, #tpu.memory_space<vmem>>, %arg4: memref<1x16x144xbf16, #tpu.memory_space<vmem>>, %arg5: memref<16x16xf32, #tpu.memory_space<vmem>>, %arg6: memref<1x16xf32, #tpu.memory_space<vmem>>, %arg7: memref<1xf32, #tpu.memory_space<smem>>, %arg8: memref<1x16x144xf32, #tpu.memory_space<vmem>>, %arg9: memref<1x144x144xf32, #tpu.memory_space<vmem>>) attributes {dimension_semantics = [#tpu.dimension_semantics<parallel>, #tpu.dimension_semantics<parallel>], iteration_bounds = array<i64: 2, 1>, scalar_prefetch = 0 : i64, scratch_operands = 0 : i64, tpu.core_type = #tpu.core_type<tc>, window_params = [{transform_indices = @transform_0, window_bounds = array<i64: 1, 16, 144>}, {transform_indices = @transform_1, window_bounds = array<i64: 1, 16, 144>}, {transform_indices = @transform_2, window_bounds = array<i64: 1, 16, 144>}, {pipeline_mode = #tpu.pipeline_mode<synchronous>, transform_indices = @transform_3, window_bounds = array<i64: 16, 16>}, {pipeline_mode = #tpu.pipeline_mode<synchronous>, transform_indices = @transform_4, window_bounds = array<i64: 1, 16>}, {transform_indices = @transform_5, window_bounds = array<i64: 1>}, {transform_indices = @transform_6, window_bounds = array<i64: 1, 16, 144>}, {transform_indices = @transform_7, window_bounds = array<i64: 1, 144, 144>}]} {
    %c0 = arith.constant 0 : index
    %c0_0 = arith.constant 0 : index
    %c0_1 = arith.constant 0 : index
    %0 = vector.load %arg2[%c0, %c0_0, %c0_1] : memref<1x16x144xf32, #tpu.memory_space<vmem>>, vector<1x16x144xf32>
    %1 = vector.shape_cast %0 : vector<1x16x144xf32> to vector<16x144xf32>
    %c0_2 = arith.constant 0 : index
    %c0_3 = arith.constant 0 : index
    %c0_4 = arith.constant 0 : index
    %2 = vector.load %arg3[%c0_2, %c0_3, %c0_4] : memref<1x16x144xf32, #tpu.memory_space<vmem>>, vector<1x16x144xf32>
    %3 = vector.shape_cast %2 : vector<1x16x144xf32> to vector<16x144xf32>
    %c0_5 = arith.constant 0 : index
    %c0_6 = arith.constant 0 : index
    %4 = vector.load %arg5[%c0_5, %c0_6] : memref<16x16xf32, #tpu.memory_space<vmem>>, vector<16x16xf32>
    %cst = arith.constant dense<0.000000e+00> : vector<16x144xf32>
    %5 = tpu.matmul %4, %3, %cst {dimension_numbers = #tpu.dot_dimension_numbers<[1], [0], [0], [1], [0, 0, 1, 1], [], []>} : vector<16x16xf32>, vector<16x144xf32>, vector<16x144xf32> -> vector<16x144xf32>
    %cst_7 = arith.constant dense<0.000000e+00> : vector<144x144xf32>
    %6 = tpu.matmul %5, %1, %cst_7 {dimension_numbers = #tpu.dot_dimension_numbers<[0], [0], [1], [1], [0, 1, 1, 1], [], []>} : vector<16x144xf32>, vector<16x144xf32>, vector<144x144xf32> -> vector<144x144xf32>
    %c0_8 = arith.constant 0 : index
    %c0_9 = arith.constant 0 : index
    %7 = vector.load %arg6[%c0_8, %c0_9] : memref<1x16xf32, #tpu.memory_space<vmem>>, vector<1x16xf32>
    %cst_10 = arith.constant dense<0.000000e+00> : vector<1x144xf32>
    %8 = tpu.matmul %7, %1, %cst_10 {dimension_numbers = #tpu.dot_dimension_numbers<[1], [0], [0], [1], [0, 0, 1, 1], [], []>} : vector<1x16xf32>, vector<16x144xf32>, vector<1x144xf32> -> vector<1x144xf32>
    %9 = vector.broadcast %8 : vector<1x144xf32> to vector<144x144xf32>
    %10 = arith.addf %6, %9 : vector<144x144xf32>
    %cst_11 = arith.constant dense<0xFF800000> : vector<144xf32>
    %11 = vector.multi_reduction <maximumf>, %10, %cst_11 [1] : vector<144x144xf32> to vector<144xf32>
    %12 = vector.shape_cast %11 : vector<144xf32> to vector<144x1xf32>
    %13 = vector.broadcast %12 : vector<144x1xf32> to vector<144x144xf32>
    %14 = arith.subf %10, %13 : vector<144x144xf32>
    %15 = math.exp %14 : vector<144x144xf32>
    %cst_12 = arith.constant dense<0.000000e+00> : vector<144xf32>
    %16 = vector.multi_reduction <add>, %15, %cst_12 [1] : vector<144x144xf32> to vector<144xf32>
    %17 = vector.shape_cast %16 : vector<144xf32> to vector<144x1xf32>
    %18 = tpu.reciprocal %17 {approx = true} : vector<144x1xf32> -> vector<144x1xf32>
    %19 = arith.mulf %17, %18 : vector<144x1xf32>
    %cst_13 = arith.constant 2.000000e+00 : f32
    %20 = vector.broadcast %cst_13 : f32 to vector<144x1xf32>
    %21 = arith.subf %20, %19 : vector<144x1xf32>
    %22 = arith.mulf %18, %21 : vector<144x1xf32>
    %23 = vector.broadcast %22 : vector<144x1xf32> to vector<144x144xf32>
    %24 = arith.mulf %15, %23 : vector<144x144xf32>
    %c0_14 = arith.constant 0 : index
    %c0_15 = arith.constant 0 : index
    %c0_16 = arith.constant 0 : index
    %25 = vector.load %arg9[%c0_14, %c0_15, %c0_16] : memref<1x144x144xf32, #tpu.memory_space<vmem>>, vector<1x144x144xf32>
    %26 = vector.shape_cast %25 : vector<1x144x144xf32> to vector<144x144xf32>
    %27 = vector.shape_cast %24 : vector<144x144xf32> to vector<1x144x144xf32>
    tpu.vector_store %arg9[%c0_14, %c0_15, %c0_16], %27 {strides = array<i32>} : memref<1x144x144xf32, #tpu.memory_space<vmem>>, vector<1x144x144xf32>,
    %28 = arith.truncf %24 : vector<144x144xf32> to vector<144x144xbf16>
    %c0_17 = arith.constant 0 : index
    %c0_18 = arith.constant 0 : index
    %c0_19 = arith.constant 0 : index
    %29 = vector.load %arg4[%c0_17, %c0_18, %c0_19] : memref<1x16x144xbf16, #tpu.memory_space<vmem>>, vector<1x16x144xbf16>
    %30 = vector.shape_cast %29 : vector<1x16x144xbf16> to vector<16x144xbf16>
    %cst_20 = arith.constant dense<0.000000e+00> : vector<144x16xf32>
    %31 = tpu.matmul %28, %30, %cst_20 {dimension_numbers = #tpu.dot_dimension_numbers<[1], [1], [0], [0], [0, 0, 1, 0], [], []>} : vector<144x144xbf16>, vector<16x144xbf16>, vector<144x16xf32> -> vector<144x16xf32>
    %c0_21 = arith.constant 0 : index
    %32 = memref.load %arg7[%c0_21] : memref<1xf32, #tpu.memory_space<smem>>
    %33 = tpu.transpose %31, [1, 0] : vector<144x16xf32> -> vector<16x144xf32>
    %34 = vector.broadcast %32 : f32 to vector<16x144xf32>
    %35 = arith.mulf %34, %33 : vector<16x144xf32>
    %36 = arith.addf %35, %3 : vector<16x144xf32>
    %c0_22 = arith.constant 0 : index
    %c0_23 = arith.constant 0 : index
    %c0_24 = arith.constant 0 : index
    %37 = vector.load %arg8[%c0_22, %c0_23, %c0_24] : memref<1x16x144xf32, #tpu.memory_space<vmem>>, vector<1x16x144xf32>
    %38 = vector.shape_cast %37 : vector<1x16x144xf32> to vector<16x144xf32>
    %39 = vector.shape_cast %36 : vector<16x144xf32> to vector<1x16x144xf32>
    tpu.vector_store %arg8[%c0_22, %c0_23, %c0_24], %39 {strides = array<i32>} : memref<1x16x144xf32, #tpu.memory_space<vmem>>, vector<1x16x144xf32>,
    return
  }
  func.func @transform_0(%arg0: i32, %arg1: i32) -> (i32, i32, i32) {
    %c0_i32 = arith.constant 0 : i32
    %c0_i32_0 = arith.constant 0 : i32
    %c0_i32_1 = arith.constant 0 : i32
    return %arg0, %c0_i32, %c0_i32_0 : i32, i32, i32
  }
  func.func @transform_1(%arg0: i32, %arg1: i32) -> (i32, i32, i32) {
    %c0_i32 = arith.constant 0 : i32
    %c0_i32_0 = arith.constant 0 : i32
    return %arg0, %c0_i32, %arg1 : i32, i32, i32
  }
  func.func @transform_2(%arg0: i32, %arg1: i32) -> (i32, i32, i32) {
    %c0_i32 = arith.constant 0 : i32
    %c0_i32_0 = arith.constant 0 : i32
    %c0_i32_1 = arith.constant 0 : i32
    return %arg0, %c0_i32, %c0_i32_0 : i32, i32, i32
  }
  func.func @transform_3(%arg0: i32, %arg1: i32) -> (i32, i32) {
    %c0_i32 = arith.constant 0 : i32
    %c0_i32_0 = arith.constant 0 : i32
    %c0_i32_1 = arith.constant 0 : i32
    return %c0_i32, %c0_i32_0 : i32, i32
  }
  func.func @transform_4(%arg0: i32, %arg1: i32) -> (i32, i32) {
    %c0_i32 = arith.constant 0 : i32
    %c0_i32_0 = arith.constant 0 : i32
    %c0_i32_1 = arith.constant 0 : i32
    return %c0_i32, %c0_i32_0 : i32, i32
  }
  func.func @transform_5(%arg0: i32, %arg1: i32) -> i32 {
    %c0_i32 = arith.constant 0 : i32
    %c0_i32_0 = arith.constant 0 : i32
    return %c0_i32 : i32
  }
  func.func @transform_6(%arg0: i32, %arg1: i32) -> (i32, i32, i32) {
    %c0_i32 = arith.constant 0 : i32
    %c0_i32_0 = arith.constant 0 : i32
    return %arg0, %c0_i32, %arg1 : i32, i32, i32
  }
  func.func @transform_7(%arg0: i32, %arg1: i32) -> (i32, i32, i32) {
    %c0_i32 = arith.constant 0 : i32
    %c0_i32_0 = arith.constant 0 : i32
    return %arg0, %arg1, %c0_i32 : i32, i32, i32
  }
}

</mosaic_0001>

<bundles_post_ra>
// kernel: tpu_custom_call.1
= control target key start
LH: loop header
LB: loop body
LE: loop exit
PB: predicated region body
PF: predicated region fallthrough
CT: control target
= control target key end

     0   :  { %s3088_s0 = inlined_call_operand.hbm [shape: f32[2,16,144], index: 0, kind: input, shape index: {}]   ;;  %s3089_s1 = inlined_call_operand.hbm [shape: f32[2,16,144], index: 1, kind: input, shape index: {}]   ;;  %s3090_s2 = inlined_call_operand.hbm [shape: bf16[2,16,144], index: 2, kind: input, shape index: {}]   ;;  %s3091_s3 = inlined_call_operand.hbm [shape: f32[16,16], index: 3, kind: input, shape index: {}]   ;;  %s3092_s4 = inlined_call_operand.vmem [shape: f32[1,16], index: 4, kind: input, shape index: {}]   ;;  %s3093_s5 = inlined_call_operand.<no memory space> [shape: f32[1], index: 5, kind: input, shape index: {}]   ;;  %s3094_s6 = inlined_call_operand.hbm [shape: f32[2,16,144], index: 6, kind: output, shape index: {0}]   ;;  %s3095_s7 = inlined_call_operand.hbm [shape: f32[2,144,144], index: 7, kind: output, shape index: {1}]  }
   0x1   :  { %3107 = sst [smem:[#allocation24_spill]] %s3088_s0 }
   0x2   :  { %3108 = sst [smem:[#allocation25_spill]] %s3089_s1 }
   0x3   :  { %3109 = sst [smem:[#allocation26_spill]] %s3091_s3 }
   0x4   :  { %13 = sst [smem:[#allocation2]] %s3093_s5 }
   0x5   :  { %14 = vsyncpa [#allocation4], 0 }
   0x6   :  { %16 = vsyncpa [#allocation4 + $0x1], 0 }
   0x7   :  { %17 = vsyncpa [#allocation7], 0 }
   0x8   :  { %19 = vsyncpa [#allocation7 + $0x1], 0 }
   0x9   :  { %20 = vsyncpa [#allocation10], 0 }
   0xa   :  { %21 = vsyncpa [#allocation5], 0 }
   0xb   :  { %23 = vsyncpa [#allocation5 + $0x1], 0 }
   0xc   :  { %24 = vsyncpa [#allocation13], 0 }
   0xd   :  { %26 = vsyncpa [#allocation13 + $0x1], 0  ;;  %s2307_s26 = smov 0   ;;  %s2309_s27 = smov 0  }
   0xe   :  { %s2311_s28 = smov 0   ;;  %s2313_s29 = smov 0  }
   0xf   :  { %s2315_s30 = smov 0   ;;  %s2317_s5 = smov 0  }
  0x10 LB: > { %3110 = sst [smem:[#allocation19_spill]] %s2237_s28  ;;  %s44_s8 = sadd.s32 1, %s2245_s30  ;;  %s2249_s5 = sphi %s2317_s5, %s32_s5   ;;  %s2245_s30 = sphi %s2315_s30, %s3142_s30   ;;  %s2241_s29 = sphi %s2313_s29, %s3141_s29   ;;  %s2237_s28 = sphi %s2311_s28, %s3137_s28   ;;  %s2233_s27 = sphi %s2309_s27, %s3140_s27   ;;  %s2229_s26 = sphi %s2307_s26, %s3139_s26  }
  0x11   : > { %3111 = sst [smem:[#allocation20_spill]] %s2249_s5  ;;  %s51_s9 = sadd.s32 1, %s2237_s28 }
  0x12   : > { %p46_p0 = scmp.ge.s32.totalorder %s44_s8, 2  ;;  %p58_p1 = scmp.ne.s32.totalorder %s2237_s28, %s2233_s27 }
  0x13   : > { %p59_p2 = scmp.eq.s32.totalorder %s2249_s5, 0  ;;  %p1847_p5 = scmp.lt.s32.totalorder %s2249_s5, 2 }
  0x14   : > { %s3144_s8 = smov (%p46_p0, %s44_s8), 0  ;;  %s2352_s11 = sand.u32 1, %s2237_s28  }
  0x15   : > { %3112 = sst [smem:[#allocation21_spill]] %s3144_s8  ;;  %p60_p4 = por %p59_p2, %p58_p1 }
  0x16   : > { %s48_s10 = ssub.s32 %s2245_s30, %s3144_s8  ;;  %s1751_s12 = sshll.u32 %s2352_s11, 5 }
  0x17   : > { %p49_p6 = scmp.eq.s32.totalorder %s48_s10, 0  ;;  %s1805_s13 = sshll.u32 %s2245_s30, 9 }
  0x18   : > { %p2356_p7 = pnand %p1847_p5, %p60_p4  ;;  %s301_s16 = sand.u32 1, %s2249_s5  }
  0x19   : > { %s2361_s15 = scalar_select %p49_p6, %s2237_s28, %s51_s9  }
  0x1a   : > { %s3115_s1 = sld [smem:[#allocation25_spill]]  ;;  %s305_s20 = scalar_lea.vmem [#allocation6], %s1751_s12 }
  0x1b   : > { %3114 = sst [smem:[#allocation22_spill]] %s2361_s15  ;;  %s314_s21 = sshll.u32 %s305_s20, 4  ;;  %s315_s21 = int_to_ptr.vmem [resolvable:$true] %s314_s21 }
  0x1c   : > { %s2371_s22 = scalar_lea.sflag [#allocation7], %s301_s16  ;;  %p3100_p8 = pneg %p2356_p7 }
  0x1d   : > { %s2034_s23 = scalar_lea.vmem %s315_s21, 512  ;;  %s2251_s24 = smov [#allocation6]  }
  0x1e   : > { %p2035_p9 = scmp.ne.s32.totalorder %s315_s21, %s2034_s23  ;;  %s2039_s25 = sshll.u32 %s2251_s24, 4  ;;  %s2040_s25 = int_to_ptr.vmem [resolvable:$false] %s2039_s25 }
  0x1f   : > { %s2041_s9 = scalar_lea.vmem %s2040_s25, 1024  ;;  %p2042_p12 = scmp.lt.s32.totalorder %s315_s21, %s2040_s25 }
  0x20   : > { %s313_s19 = scalar_lea.hbm %s3115_s1, %s1805_s13  ;;  %p2037_p10 = pnand %p2035_p9, %p3100_p8 }
  0x21   : > { %p2043_p13 = scmp.lt.s32.totalorder %s2041_s9, %s2034_s23 }
  0x22   : > { %p2038_p11 = pneg %p2037_p10 }
  0x23   : > { %p2044_p0 = por %p2043_p13, %p2042_p12 }
  0x25   : > { %p2045_p2 = pnand %p2044_p0, %p2038_p11 }
  0x27   : > { %2048 = shalt.err (!%p2045_p2)
}
  0x28   : > { %s3096_s10 = smov 256   ;;  %s3097_s16 = smov 16  }
  0x29   : > { %1835 = dma.hbm_to_vmem [thread:$0]  (!%p2356_p7), %s313_s19, 512, %s315_s21, %s2371_s22, %s3096_s10, %s3096_s10, %s3097_s16  }
  0x2a   : > { %s2385_s17 = sadd.s32 4294967295, %s2249_s5   ;;  %s1747_s18 = sadd.s32 4294967294, %s2249_s5  }
  0x2b   : > { %p64_p4 = scmp.ne.s32.totalorder %s2233_s27, %s2229_s26  ;;  %p3099_p5 = scmp.eq.s32.totalorder %s2385_s17, 0 }
  0x2c   : > { %p207_p6 = scmp.eq.s32.totalorder %s2385_s17, 1  ;;  %p213_p9 = scmp.eq.s32.totalorder %s1747_s18, 1 }
  0x2d   : > { %p1748_p10 = scmp.ge.s32.totalorder %s2249_s5, 1  ;;  %p2395_p11 = por %p3099_p5, %p64_p4 }
  0x2e   : > { %p2402_p12 = por %p207_p6, %p58_p1  ;;  %p2406_p13 = por %p213_p9, %p64_p4 }
  0x2f   : > { %p248_p0 = scmp.lt.s32.totalorder %s2249_s5, 3  ;;  %s2254_s24 = smov [#allocation9]  }
  0x30   : > { %s3118_s21 = scalar_select %p2406_p13, 1, 0 }
  0x31   : > { %p2411_p2 = pnand %p1748_p10, %p248_p0  ;;  %s260_s25 = sshll.u32 %s2254_s24, 4  ;;  %s261_s25 = int_to_ptr.vmem [resolvable:$true] %s260_s25 }
  0x32   : > { %3119 = sst [smem:[#allocation23_spill]] %s3118_s21  ;;  %s284_s1 = scalar_lea.vmem [#allocation3], %s1751_s12 }
  0x33   : > { %p1825_p3 = pneg %p2411_p2  ;;  %s3122_s0 = sld [smem:[#allocation24_spill]] }
  0x34   : > { %s291_s8 = sshll.u32 %s284_s1, 4  ;;  %s2060_s24 = scalar_lea.vmem %s261_s25, 256  ;;  %s2433_s8 = int_to_ptr.vmem [resolvable:$true] %s291_s8 }
  0x35   : > { %p2419_p1 = pnand %p1825_p3, %p3099_p5  ;;  %p2061_p3 = scmp.ne.s32.totalorder %s261_s25, %s2060_s24 }
  0x36   : > { %p2068_p10 = scmp.lt.s32.totalorder %s261_s25, %s261_s25  ;;  %p2069_p0 = scmp.lt.s32.totalorder %s2060_s24, %s2060_s24 }
  0x37   : > { %p2051_p4 = pneg %p2419_p1 }
  0x38   : > { %p2070_p5 = por %p2069_p0, %p2068_p10 }
  0x39   : > { %s2428_s16 = scalar_lea.hbm %s3122_s0, %s1805_s13  ;;  %p2063_p6 = pnand %p2061_p3, %p2051_p4 }
  0x3b   : > { %p2064_p9 = pneg %p2063_p6 }
  0x3d   : > { %p2071_p8 = pnand %p2070_p5, %p2064_p9 }
  0x3f   : > { %2074 = shalt.err (!%p2071_p8)
}
  0x40   : > { %s3102_s10 = smov 128   ;;  %s3103_s1 = smov 8  }
  0x41   : > { %s3123_s3 = sld [smem:[#allocation26_spill]]  ;;  %s281_s18 = scalar_lea.sflag [#allocation4], %s2352_s11 }
  0x42   : > { %s2088_s24 = scalar_lea.vmem %s2433_s8, 512  ;;  %p3124_p8 = pneg %p2356_p7 }
  0x43   : > { %p2089_p5 = scmp.ne.s32.totalorder %s2433_s8, %s2088_s24  ;;  %s2257_s15 = smov [#allocation3]  }
  0x44   : > { %s2093_s0 = sshll.u32 %s2257_s15, 4  ;;  %s2094_s0 = int_to_ptr.vmem [resolvable:$false] %s2093_s0 }
  0x45   : > { %p2091_p4 = pnand %p2089_p5, %p3124_p8  ;;  %s2095_s28 = scalar_lea.vmem %s2094_s0, 1024 }
  0x46   : > { %p2096_p6 = scmp.lt.s32.totalorder %s2433_s8, %s2094_s0  ;;  %p2097_p9 = scmp.lt.s32.totalorder %s2095_s28, %s2088_s24 }
  0x47   : > { %1828 = dma.hbm_to_vmem [thread:$0]  (!%p2419_p1), %s3123_s3, 256, %s261_s25, [#allocation10], %s3102_s10, %s3102_s10, %s3103_s1  }
  0x48   : > { %p2092_p3 = pneg %p2091_p4  ;;  %p2098_p10 = por %p2097_p9, %p2096_p6 }
  0x4a   : > { %p2099_p0 = pnand %p2098_p10, %p2092_p3 }
  0x4c   : > { %2102 = shalt.err (!%p2099_p0)
}
  0x4d   : > { %s3125_s9 = smov 16   ;;  %s3126_s25 = smov 256  }
  0x4e   : > { %1832 = dma.hbm_to_vmem [thread:$0]  (!%p2356_p7), %s2428_s16, 512, %s2433_s8, %s281_s18, %s3126_s25, %s3126_s25, %s3125_s9  }
  0x4f   : > { %s1807_s12 = sshll.u32 %s2245_s30, 8  ;;  %s3127_s28 = sshll.u32 %s2352_s11, 4 }
  0x50   : > { %s334_s0 = scalar_lea.hbm %s3090_s2, %s1807_s12  ;;  %s328_s24 = scalar_lea.vmem [#allocation8], %s3127_s28 }
  0x51   : > { %s335_s10 = sshll.u32 %s328_s24, 4  ;;  %p3128_p5 = pmov %p3124_p8  ;;  %s336_s10 = int_to_ptr.vmem [resolvable:$true] %s335_s10 }
  0x52   : > { %s2116_s1 = scalar_lea.vmem %s336_s10, 256  ;;  %s2258_s3 = smov [#allocation8]  }
  0x53   : > { %p2117_p1 = scmp.ne.s32.totalorder %s336_s10, %s2116_s1  ;;  %s2121_s5 = sshll.u32 %s2258_s3, 4  ;;  %s2122_s5 = int_to_ptr.vmem [resolvable:$false] %s2121_s5 }
  0x54   : > { %s2123_s21 = scalar_lea.vmem %s2122_s5, 512  ;;  %p2124_p3 = scmp.lt.s32.totalorder %s336_s10, %s2122_s5 }
  0x55   : > { %p2119_p8 = pnand %p2117_p1, %p3128_p5  ;;  %p2125_p6 = scmp.lt.s32.totalorder %s2123_s21, %s2116_s1 }
  0x57   : > { %p2120_p4 = pneg %p2119_p8  ;;  %p2126_p9 = por %p2125_p6, %p2124_p3 }
  0x59   : > { %p2127_p10 = pnand %p2126_p9, %p2120_p4 }
  0x5b   : > { %2130 = shalt.err (!%p2127_p10)
}
  0x5c   : > { %s3129_s8 = smov 8   ;;  %s3130_s11 = smov 128  }
  0x5d   : > { %1838 = dma.hbm_to_vmem [thread:$0]  (!%p2356_p7), %s334_s0, 256, %s336_s10, %s2371_s22, %s3130_s11, %s3130_s11, %s3129_s8  }
  0x5e   : > { %347 = sbr.rel (%p2411_p2) target bundleno = 1361 (0x551), region = 44  ;;  %s2477_s3 = sand.u32 (!%p2411_p2), 1, %s2233_s27  }
  0x5f   : > { %s2480_s5 = sshll.u32 (!%p2411_p2), %s2477_s3, 5  ;;  %s350_s16 = scalar_lea.sflag (!%p2411_p2), [#allocation4], %s2477_s3 }
  0x60   : > { %s2484_s21 = scalar_lea.vmem (!%p2411_p2), [#allocation3], %s2480_s5 }
  0x63   : > { %2208 = dma.done.wait (%p2395_p11), %s350_s16, 512  }
  0x64   : > { %2210 = vsyncadd (%p2395_p11), %s350_s16, 4294966784  ;;  %s358_s14 = sand.u32 1, %s2385_s17   ;;  %s2492_s23 = scalar_lea.vmem [#allocation6], %s2480_s5 }
  0x65   : > { %s359_s22 = scalar_lea.sflag [#allocation7], %s358_s14 }
  0x66   : > { %2212 = dma.done.wait (%p2395_p11), %s359_s22, 768  }
  0x67   : > { %2214 = vsyncadd (%p2395_p11), %s359_s22, 4294966528  ;;  %s1763_s10 = sshll.u32 %s2477_s3, 4  ;;  %p3131_p7 = scmp.eq.s32.totalorder %s2385_s17, 0 }
  0x68   : > { %s2499_s1 = scalar_lea.vmem [#allocation8], %s1763_s10 }
  0x69   : > { %2216 = dma.done.wait (%p3131_p7), [#allocation10], 256   ;;  %p3132_p2 = pmov %p3131_p7 }
  0x6a   : > { %v2259_v0 = vmov 0.0   ;;  %v432_v1 = vld [vmem:[%s2492_s23 + $0x18] sm:$0xff]  ;;  %v431_v2 = vld [vmem:[%s2492_s23 + $0x10] sm:$0xff]  ;;  %v430_v3 = vld [vmem:[%s2492_s23 + $0x8] sm:$0xff]  ;;  %vm435_vm0 = vcmask 130048   ;;  %v594_v34 = vlaneseq  ;;  %s1809_s18 = smul.u32 288, %s2477_s3 }
  0x6b   : > { %2218 = vsyncadd (%p3132_p2), [#allocation10], 4294967040  ;;  %506 = vmatprep.mubr.f32.mxu0 %v2259_v0  ;;  %587 = vmatprep.mubr.f32.mxu1 %v2259_v0  ;;  %v429_v4 = vld [vmem:[%s2492_s23] sm:$0xff]  ;;  %v434_v6 = vld [vmem:[#allocation9 + $0x8] sm:$0xff]  ;;  %s1810_s25 = smul.u32 4608, %s2241_s29  ;;  %s1537_s28 = scalar_lea.sflag [#allocation13], %s2477_s3 }
  0x6c   : > { %470 = vmatprep.subr.mxu0 %v432_v1  ;;  %v433_v5 = vld [vmem:[#allocation9] sm:$0xff]  ;;  %v428_v7 = vld [vmem:[%s2484_s21 + $0x18] sm:$0xff]  ;;  %v427_v8 = vld [vmem:[%s2484_s21 + $0x10] sm:$0xff]  ;;  %v595_v35 = vshrl.u32 %v594_v34, 7  ;;  %s2892_s9 = scalar_lea.vmem [#allocation12], %s1809_s18  ;;  %s2260_s8 = smov [#allocation12]  }
  0x6d   : > { %471 = vmatpush1.msra.mxu0 %v431_v2  ;;  %v426_v9 = vld [vmem:[%s2484_s21 + $0x8] sm:$0xff]  ;;  %551 = vmatprep.subr.mxu1 %v428_v7  ;;  %v425_v10 = vld [vmem:[%s2484_s21] sm:$0xff]  ;;  %s1571_s12 = sshll.u32 %s2892_s9, 4  ;;  %s2996_s0 = scalar_lea.hbm %s3095_s7, %s1810_s25  ;;  %s2998_s12 = int_to_ptr.vmem [resolvable:$true] %s1571_s12 }
  0x6e   : > { %472 = vmatprep.subr.mxu0 %v430_v3  ;;  %552 = vmatpush1.msra.mxu1 %v427_v8  ;;  %v519_v11 = vld [vmem:[%s3092_s4] sm:$0x1]  ;;  %v596_v37 = vsub.s32 0, %v595_v35  ;;  %s2131_s24 = scalar_lea.vmem %s2998_s12, 4608  ;;  %s2135_s11 = sshll.u32 %s2260_s8, 4  ;;  %s2136_s11 = int_to_ptr.vmem [resolvable:$false] %s2135_s11 }
  0x6f   : > { %473 = vmatpush1.msra.mxu0 %v429_v4  ;;  %553 = vmatprep.subr.mxu1 %v426_v9  ;;  %p2132_p11 = scmp.ne.s32.totalorder %s2998_s12, %s2131_s24  ;;  %s2137_s16 = scalar_lea.vmem %s2136_s11, 9216 }
  0x70   : > { %1766 = vmatmul.mubr.msk.f32.vlgmr.msra.gmra.mxu0 %vm435_vm0, %v433_v5  ;;  %554 = vmatpush1.msra.mxu1 %v425_v10  ;;  %p2138_p5 = scmp.lt.s32.totalorder %s2998_s12, %s2136_s11  ;;  %p2139_p8 = scmp.lt.s32.totalorder %s2137_s16, %s2131_s24 }
  0x71   : > { %512 = vmatprep.mubr.f32.mxu0 %v2259_v0  ;;  %1768 = vmatmul.mubr.msk.f32.vlgmr.msra.gmra.mxu1 %vm435_vm0, %v519_v11  ;;  %p2133_p0 = pnand %p2132_p11, %p2402_p12 }
  0x72   : > { %748 = vmatprep.subr.mxu1 %v428_v7  ;;  %784 = vmatprep.mubr.f32.mxu1 %v2259_v0  ;;  %p2140_p4 = por %p2139_p8, %p2138_p5 }
  0x73   : > { %749 = vmatpush1.msra.mxu1 %v427_v8  ;;  %p2134_p1 = pneg %p2133_p0 }
  0x74   : > { %1767 = vmatmul.mubr.msk.f32.gmra.mxu0 %vm435_vm0, %v434_v6  ;;  %750 = vmatprep.subr.mxu1 %v426_v9 }
  0x75   : > { %751 = vmatpush1.msra.mxu1 %v425_v10  ;;  %p2141_p3 = pnand %p2140_p4, %p2134_p1 }
 0x130   : > { %v508_v12 = vpop.f32.mrf.mxu0 }
 0x131   : > { %602 = vxpose.xlu0.b32.start [1/2] (short) %v508_v12, 128  ;;  %v589_v36 = vpop.f32.mrf.mxu1 }
 0x132   : > { %v510_v13 = vpop.f32.mrf.mxu0  ;;  %v2560_v41 = vrot.slane %v589_v36, %v596_v37 }
 0x133   : > { %634 = vxpose.xlu1.b32.start [1/2] (short) (narrow) %v510_v13, 16  ;;  %v591_v38 = vpop.f32.mrf.mxu1 }
 0x134   : > { %v514_v14 = vpop.f32.mrf.mxu0  ;;  %v2558_v40 = vrot.slane %v591_v38, %v596_v37 }
 0x135   : > { %603 = vxpose.xlu0.b32.end [2/2] (short) %v514_v14, 128 }
 0x136   : > { %v516_v15 = vpop.f32.mrf.mxu0 }
 0x137   : > { %635 = vxpose.xlu1.b32.end [2/2] (short) (narrow) %v516_v15, 16 }
 0x1ad   : > { %v618_v16 = vpop.trf.xlu0 }
 0x1ae   : > { %1769 = vmatmul.mubr.msk.f32.vlgmr.msra.gmra.mxu1 %vm435_vm0, %v618_v16 }
 0x1af   : > { %790 = vmatprep.mubr.f32.mxu1 %v2259_v0  ;;  %v650_v32 = vpop.trf.xlu1 }
 0x1b1   : > { %v619_v17 = vpop.trf.xlu0 }
 0x1b2   : > { %1770 = vmatmul.mubr.msk.f32.gmra.mxu1 %vm435_vm0, %v619_v17 }
 0x1b3   : > { %796 = vmatprep.mubr.f32.mxu1 %v2259_v0  ;;  %v651_v33 = vpop.trf.xlu1 }
 0x1b5   : > { %v620_v18 = vpop.trf.xlu0 }
 0x1b6   : > { %1771 = vmatmul.mubr.msk.f32.gmra.mxu1 %vm435_vm0, %v620_v18 }
 0x1b7   : > { %802 = vmatprep.mubr.f32.mxu1 %v2259_v0 }
 0x1b9   : > { %v621_v19 = vpop.trf.xlu0 }
 0x1ba   : > { %1772 = vmatmul.mubr.msk.f32.gmra.mxu1 %vm435_vm0, %v621_v19 }
 0x1bb   : > { %808 = vmatprep.mubr.f32.mxu1 %v2259_v0 }
 0x1bd   : > { %v622_v20 = vpop.trf.xlu0 }
 0x1be   : > { %1773 = vmatmul.mubr.msk.f32.gmra.mxu1 %vm435_vm0, %v622_v20 }
 0x1bf   : > { %814 = vmatprep.mubr.f32.mxu1 %v2259_v0 }
 0x1c1   : > { %v623_v21 = vpop.trf.xlu0 }
 0x1c2   : > { %1774 = vmatmul.mubr.msk.f32.gmra.mxu1 %vm435_vm0, %v623_v21 }
 0x1c3   : > { %820 = vmatprep.mubr.f32.mxu1 %v2259_v0 }
 0x1c5   : > { %v624_v22 = vpop.trf.xlu0 }
 0x1c6   : > { %1775 = vmatmul.mubr.msk.f32.gmra.mxu1 %vm435_vm0, %v624_v22 }
 0x1c7   : > { %826 = vmatprep.mubr.f32.mxu1 %v2259_v0 }
 0x1c9   : > { %v625_v23 = vpop.trf.xlu0 }
 0x1ca   : > { %1776 = vmatmul.mubr.msk.f32.gmra.mxu1 %vm435_vm0, %v625_v23 }
 0x1cb   : > { %832 = vmatprep.mubr.f32.mxu1 %v2259_v0 }
 0x1cd   : > { %v626_v24 = vpop.trf.xlu0 }
 0x1ce   : > { %1777 = vmatmul.mubr.msk.f32.gmra.mxu1 %vm435_vm0, %v626_v24 }
 0x1cf   : > { %838 = vmatprep.mubr.f32.mxu1 %v2259_v0 }
 0x1d1   : > { %v627_v25 = vpop.trf.xlu0 }
 0x1d2   : > { %1778 = vmatmul.mubr.msk.f32.gmra.mxu1 %vm435_vm0, %v627_v25 }
 0x1d3   : > { %844 = vmatprep.mubr.f32.mxu1 %v2259_v0 }
 0x1d5   : > { %v628_v26 = vpop.trf.xlu0 }
 0x1d6   : > { %1779 = vmatmul.mubr.msk.f32.gmra.mxu1 %vm435_vm0, %v628_v26 }
 0x1d7   : > { %850 = vmatprep.mubr.f32.mxu1 %v2259_v0 }
 0x1d9   : > { %v629_v27 = vpop.trf.xlu0 }
 0x1da   : > { %1780 = vmatmul.mubr.msk.f32.gmra.mxu1 %vm435_vm0, %v629_v27 }
 0x1db   : > { %856 = vmatprep.mubr.f32.mxu1 %v2259_v0 }
 0x1dd   : > { %v630_v28 = vpop.trf.xlu0 }
 0x1de   : > { %1781 = vmatmul.mubr.msk.f32.gmra.mxu1 %vm435_vm0, %v630_v28 }
 0x1df   : > { %862 = vmatprep.mubr.f32.mxu1 %v2259_v0 }
 0x1e1   : > { %v631_v29 = vpop.trf.xlu0 }
 0x1e2   : > { %1782 = vmatmul.mubr.msk.f32.gmra.mxu1 %vm435_vm0, %v631_v29 }
 0x1e3   : > { %868 = vmatprep.mubr.f32.mxu1 %v2259_v0 }
 0x1e5   : > { %v632_v30 = vpop.trf.xlu0 }
 0x1e6   : > { %1783 = vmatmul.mubr.msk.f32.gmra.mxu1 %vm435_vm0, %v632_v30 }
 0x1e7   : > { %874 = vmatprep.mubr.f32.mxu1 %v2259_v0 }
 0x1e9   : > { %v633_v31 = vpop.trf.xlu0 }
 0x1ea   : > { %1784 = vmatmul.mubr.msk.f32.gmra.mxu1 %vm435_vm0, %v633_v31 }
 0x1eb   : > { %880 = vmatprep.mubr.f32.mxu1 %v2259_v0 }
 0x1ee   : > { %1785 = vmatmul.mubr.msk.f32.gmra.mxu1 %vm435_vm0, %v650_v32 }
 0x1ef   : > { %886 = vmatprep.mubr.f32.mxu1 %v2259_v0 }
 0x1f2   : > { %1786 = vmatmul.mubr.msk.f32.gmra.mxu1 %vm435_vm0, %v651_v33 }
 0x26e   : > { %v786_v39 = vpop.f32.mrf.mxu1 }
 0x26f   : > { %v2566_v44 = vadd.f32 %v786_v39, %v2560_v41 }
 0x270   : > { %v788_v42 = vpop.f32.mrf.mxu1 }
 0x271   : > { %v2563_v43 = vadd.f32 %v788_v42, %v2558_v40 }
 0x272   : > { %v792_v45 = vpop.f32.mrf.mxu1 }
 0x273   : > { %v893_v46 = vsel %vm435_vm0, %v2563_v43, -inf  ;;  %v2575_v50 = vadd.f32 %v792_v45, %v2560_v41 }
 0x274   : > { %v794_v47 = vpop.f32.mrf.mxu1  ;;  %v894_v48 = vmax.f32 %v2566_v44, %v893_v46 }
 0x275   : > { %v2572_v49 = vadd.f32 %v794_v47, %v2558_v40 }
 0x276   : > { %v798_v51 = vpop.f32.mrf.mxu1  ;;  %895 = vmax.xlane.f32.xlu0 %v894_v48 }
 0x277   : > { %v897_v52 = vsel %vm435_vm0, %v2572_v49, -inf  ;;  %v2584_v56 = vadd.f32 %v798_v51, %v2560_v41 }
 0x278   : > { %v800_v53 = vpop.f32.mrf.mxu1  ;;  %v898_v54 = vmax.f32 %v2575_v50, %v897_v52 }
 0x279   : > { %v2581_v55 = vadd.f32 %v800_v53, %v2558_v40 }
 0x27a   : > { %v804_v57 = vpop.f32.mrf.mxu1  ;;  %899 = vmax.xlane.f32.xlu1 %v898_v54 }
 0x27b   : > { %v901_v58 = vsel %vm435_vm0, %v2581_v55, -inf  ;;  %v2593_v62 = vadd.f32 %v804_v57, %v2560_v41 }
 0x27c   : > { %v806_v59 = vpop.f32.mrf.mxu1  ;;  %v902_v60 = vmax.f32 %v2584_v56, %v901_v58 }
 0x27d   : > { %v2590_v61 = vadd.f32 %v806_v59, %v2558_v40 }
 0x27e   : > { %v810_v63 = vpop.f32.mrf.mxu1  ;;  %903 = vmax.xlane.f32.xlu1 %v902_v60 }
 0x27f   : > { %v905_v0 = vsel %vm435_vm0, %v2590_v61, -inf  ;;  %v2602_v4 = vadd.f32 %v810_v63, %v2560_v41 }
 0x280   : > { %v812_v1 = vpop.f32.mrf.mxu1  ;;  %v906_v2 = vmax.f32 %v2593_v62, %v905_v0 }
 0x281   : > { %v2599_v3 = vadd.f32 %v812_v1, %v2558_v40 }
 0x282   : > { %v816_v5 = vpop.f32.mrf.mxu1  ;;  %907 = vmax.xlane.f32.xlu1 %v906_v2 }
 0x283   : > { %v909_v6 = vsel %vm435_vm0, %v2599_v3, -inf  ;;  %v2611_v10 = vadd.f32 %v816_v5, %v2560_v41 }
 0x284   : > { %v818_v7 = vpop.f32.mrf.mxu1  ;;  %v910_v8 = vmax.f32 %v2602_v4, %v909_v6 }
 0x285   : > { %v2608_v9 = vadd.f32 %v818_v7, %v2558_v40 }
 0x286   : > { %v822_v11 = vpop.f32.mrf.mxu1  ;;  %911 = vmax.xlane.f32.xlu1 %v910_v8 }
 0x287   : > { %v913_v12 = vsel %vm435_vm0, %v2608_v9, -inf  ;;  %v2620_v16 = vadd.f32 %v822_v11, %v2560_v41 }
 0x288   : > { %v824_v13 = vpop.f32.mrf.mxu1  ;;  %v914_v14 = vmax.f32 %v2611_v10, %v913_v12 }
 0x289   : > { %v2617_v15 = vadd.f32 %v824_v13, %v2558_v40 }
 0x28a   : > { %v828_v17 = vpop.f32.mrf.mxu1  ;;  %915 = vmax.xlane.f32.xlu1 %v914_v14 }
 0x28b   : > { %v917_v18 = vsel %vm435_vm0, %v2617_v15, -inf  ;;  %v2629_v22 = vadd.f32 %v828_v17, %v2560_v41 }
 0x28c   : > { %v830_v19 = vpop.f32.mrf.mxu1  ;;  %v918_v20 = vmax.f32 %v2620_v16, %v917_v18 }
 0x28d   : > { %v2626_v21 = vadd.f32 %v830_v19, %v2558_v40 }
 0x28e   : > { %v834_v23 = vpop.f32.mrf.mxu1  ;;  %919 = vmax.xlane.f32.xlu1 %v918_v20 }
 0x28f   : > { %v921_v24 = vsel %vm435_vm0, %v2626_v21, -inf  ;;  %v2638_v28 = vadd.f32 %v834_v23, %v2560_v41 }
 0x290   : > { %v836_v25 = vpop.f32.mrf.mxu1  ;;  %v922_v26 = vmax.f32 %v2629_v22, %v921_v24 }
 0x291   : > { %v2635_v27 = vadd.f32 %v836_v25, %v2558_v40 }
 0x292   : > { %v840_v29 = vpop.f32.mrf.mxu1  ;;  %923 = vmax.xlane.f32.xlu1 %v922_v26 }
 0x293   : > { %v925_v30 = vsel %vm435_vm0, %v2635_v27, -inf  ;;  %v2647_v34 = vadd.f32 %v840_v29, %v2560_v41 }
 0x294   : > { %v842_v31 = vpop.f32.mrf.mxu1  ;;  %v926_v32 = vmax.f32 %v2638_v28, %v925_v30 }
 0x295   : > { %v2644_v33 = vadd.f32 %v842_v31, %v2558_v40 }
 0x296   : > { %v846_v35 = vpop.f32.mrf.mxu1  ;;  %927 = vmax.xlane.f32.xlu1 %v926_v32 }
 0x297   : > { %v929_v36 = vsel %vm435_vm0, %v2644_v33, -inf  ;;  %v2656_v42 = vadd.f32 %v846_v35, %v2560_v41 }
 0x298   : > { %v848_v37 = vpop.f32.mrf.mxu1  ;;  %v930_v38 = vmax.f32 %v2647_v34, %v929_v36 }
 0x299   : > { %v2653_v39 = vadd.f32 %v848_v37, %v2558_v40 }
 0x29a   : > { %v852_v45 = vpop.f32.mrf.mxu1  ;;  %931 = vmax.xlane.f32.xlu1 %v930_v38 }
 0x29b   : > { %v933_v46 = vsel %vm435_vm0, %v2653_v39, -inf  ;;  %v2665_v52 = vadd.f32 %v852_v45, %v2560_v41 }
 0x29c   : > { %v854_v47 = vpop.f32.mrf.mxu1  ;;  %v934_v48 = vmax.f32 %v2656_v42, %v933_v46 }
 0x29d   : > { %v2662_v51 = vadd.f32 %v854_v47, %v2558_v40 }
 0x29e   : > { %v858_v53 = vpop.f32.mrf.mxu1  ;;  %935 = vmax.xlane.f32.xlu1 %v934_v48 }
 0x29f   : > { %v937_v54 = vsel %vm435_vm0, %v2662_v51, -inf  ;;  %v2674_v60 = vadd.f32 %v858_v53, %v2560_v41 }
 0x2a0   : > { %v860_v57 = vpop.f32.mrf.mxu1  ;;  %v938_v58 = vmax.f32 %v2665_v52, %v937_v54 }
 0x2a1   : > { %v2671_v59 = vadd.f32 %v860_v57, %v2558_v40 }
 0x2a2   : > { %v864_v63 = vpop.f32.mrf.mxu1  ;;  %939 = vmax.xlane.f32.xlu1 %v938_v58 }
 0x2a3   : > { %v941_v0 = vsel %vm435_vm0, %v2671_v59, -inf  ;;  %v2683_v6 = vadd.f32 %v864_v63, %v2560_v41 }
 0x2a4   : > { %v866_v1 = vpop.f32.mrf.mxu1  ;;  %v942_v2 = vmax.f32 %v2674_v60, %v941_v0 }
 0x2a5   : > { %v2680_v5 = vadd.f32 %v866_v1, %v2558_v40 }
 0x2a6   : > { %v870_v7 = vpop.f32.mrf.mxu1  ;;  %943 = vmax.xlane.f32.xlu1 %v942_v2 }
 0x2a7   : > { %v945_v8 = vsel %vm435_vm0, %v2680_v5, -inf  ;;  %v2692_v14 = vadd.f32 %v870_v7, %v2560_v41 }
 0x2a8   : > { %v872_v11 = vpop.f32.mrf.mxu1  ;;  %v946_v12 = vmax.f32 %v2683_v6, %v945_v8 }
 0x2a9   : > { %v2689_v13 = vadd.f32 %v872_v11, %v2558_v40 }
 0x2aa   : > { %v876_v17 = vpop.f32.mrf.mxu1  ;;  %947 = vmax.xlane.f32.xlu1 %v946_v12 }
 0x2ab   : > { %v949_v18 = vsel %vm435_vm0, %v2689_v13, -inf  ;;  %v2701_v24 = vadd.f32 %v876_v17, %v2560_v41 }
 0x2ac   : > { %v878_v19 = vpop.f32.mrf.mxu1  ;;  %v950_v20 = vmax.f32 %v2692_v14, %v949_v18 }
 0x2ad   : > { %v2698_v23 = vadd.f32 %v878_v19, %v2558_v40 }
 0x2ae   : > { %v882_v25 = vpop.f32.mrf.mxu1  ;;  %951 = vmax.xlane.f32.xlu1 %v950_v20 }
 0x2af   : > { %v953_v26 = vsel %vm435_vm0, %v2698_v23, -inf  ;;  %v2710_v32 = vadd.f32 %v882_v25, %v2560_v41 }
 0x2b0   : > { %v884_v29 = vpop.f32.mrf.mxu1  ;;  %v954_v30 = vmax.f32 %v2701_v24, %v953_v26 }
 0x2b1   : > { %v2707_v31 = vadd.f32 %v884_v29, %v2558_v40 }
 0x2b2   : > { %v888_v35 = vpop.f32.mrf.mxu1  ;;  %955 = vmax.xlane.f32.xlu1 %v954_v30 }
 0x2b3   : > { %v957_v36 = vsel %vm435_vm0, %v2707_v31, -inf  ;;  %v2719_v46 = vadd.f32 %v888_v35, %v2560_v41 }
 0x2b4   : > { %v890_v37 = vpop.f32.mrf.mxu1  ;;  %v958_v38 = vmax.f32 %v2710_v32, %v957_v36 }
 0x2b5   : > { %v2716_v45 = vadd.f32 %v890_v37, %v2558_v40 }
 0x2b6   : > { %959 = vmax.xlane.f32.xlu1 %v958_v38 }
 0x2b7   : > { %v961_v47 = vsel %vm435_vm0, %v2716_v45, -inf }
 0x2b8   : > { %v962_v48 = vmax.f32 %v2719_v46, %v961_v47 }
 0x2ba   : > { %963 = vmax.xlane.f32.xlu1 %v962_v48 }
 0x2ff   : > { %v896_v53 = vpop.xlane.xlu0 %895 }
 0x300   : > { %v965_v54 = vsub.f32 %v2566_v44, %v896_v53  ;;  %v966_v57 = vsub.f32 %v2563_v43, %v896_v53 }
 0x302   : > { %v1001_v58 = vmul.f32 1.442695, %v965_v54  ;;  %v1003_v63 = vmul.f32 1.442695, %v966_v57 }
 0x303   : > { %v900_v0 = vpop.xlane.xlu1 %899 }
 0x304   : > { %1909 = vpow2.f32 %v1001_v58  ;;  %v967_v40 = vsub.f32 %v2575_v50, %v900_v0  ;;  %v968_v41 = vsub.f32 %v2572_v49, %v900_v0 }
 0x305   : > { %1911 = vpow2.f32 %v1003_v63 }
 0x306   : > { %v1005_v1 = vmul.f32 1.442695, %v967_v40  ;;  %v1007_v2 = vmul.f32 1.442695, %v968_v41 }
 0x307   : > { %v904_v7 = vpop.xlane.xlu1 %903 }
 0x308   : > { %1913 = vpow2.f32 %v1005_v1  ;;  %v969_v8 = vsub.f32 %v2584_v56, %v904_v7  ;;  %v970_v11 = vsub.f32 %v2581_v55, %v904_v7 }
 0x309   : > { %1915 = vpow2.f32 %v1007_v2 }
 0x30a   : > { %v1009_v44 = vmul.f32 1.442695, %v969_v8  ;;  %v1011_v43 = vmul.f32 1.442695, %v970_v11 }
 0x30b   : > { %v908_v12 = vpop.xlane.xlu1 %907 }
 0x30c   : > { %1917 = vpow2.f32 %v1009_v44  ;;  %v971_v17 = vsub.f32 %v2593_v62, %v908_v12  ;;  %v972_v50 = vsub.f32 %v2590_v61, %v908_v12 }
 0x30d   : > { %1919 = vpow2.f32 %v1011_v43 }
 0x30e   : > { %v1013_v49 = vmul.f32 1.442695, %v971_v17  ;;  %v1015_v18 = vmul.f32 1.442695, %v972_v50 }
 0x30f   : > { %v912_v19 = vpop.xlane.xlu1 %911 }
 0x310   : > { %1921 = vpow2.f32 %v1013_v49  ;;  %v973_v20 = vsub.f32 %v2602_v4, %v912_v19  ;;  %v974_v56 = vsub.f32 %v2599_v3, %v912_v19 }
 0x311   : > { %v2734_v25 = vpop.eup %1909  ;;  %1923 = vpow2.f32 %v1015_v18 }
 0x312   : > { %v2736_v55 = vpop.eup %1911  ;;  %v1017_v26 = vmul.f32 1.442695, %v973_v20  ;;  %v1019_v29 = vmul.f32 1.442695, %v974_v56 }
 0x313   : > { %v916_v30 = vpop.xlane.xlu1 %915  ;;  %v1073_v61 = vsel %vm435_vm0, %v2736_v55, 0.0 }
 0x314   : > { %1925 = vpow2.f32 %v1017_v26  ;;  %v975_v62 = vsub.f32 %v2611_v10, %v916_v30  ;;  %v976_v35 = vsub.f32 %v2608_v9, %v916_v30  ;;  %v1074_v4 = vadd.f32 %v2734_v25, %v1073_v61 }
 0x315   : > { %v2743_v36 = vpop.eup %1913  ;;  %1927 = vpow2.f32 %v1019_v29 }
 0x316   : > { %v2745_v3 = vpop.eup %1915  ;;  %v1021_v37 = vmul.f32 1.442695, %v975_v62  ;;  %v1023_v38 = vmul.f32 1.442695, %v976_v35  ;;  %1075 = vadd.xlane.f32.xlu0 %v1074_v4 }
 0x317   : > { %v920_v47 = vpop.xlane.xlu1 %919  ;;  %v1077_v48 = vsel %vm435_vm0, %v2745_v3, 0.0 }
 0x318   : > { %1929 = vpow2.f32 %v1021_v37  ;;  %v977_v53 = vsub.f32 %v2620_v16, %v920_v47  ;;  %v978_v10 = vsub.f32 %v2617_v15, %v920_v47  ;;  %v1078_v9 = vadd.f32 %v2743_v36, %v1077_v48 }
 0x319   : > { %v2752_v54 = vpop.eup %1917  ;;  %1931 = vpow2.f32 %v1023_v38 }
 0x31a   : > { %v2754_v57 = vpop.eup %1919  ;;  %v1025_v58 = vmul.f32 1.442695, %v977_v53  ;;  %v1027_v63 = vmul.f32 1.442695, %v978_v10  ;;  %1079 = vadd.xlane.f32.xlu1 %v1078_v9 }
 0x31b   : > { %v924_v0 = vpop.xlane.xlu1 %923  ;;  %v1081_v40 = vsel %vm435_vm0, %v2754_v57, 0.0 }
 0x31c   : > { %1933 = vpow2.f32 %v1025_v58  ;;  %v979_v41 = vsub.f32 %v2629_v22, %v924_v0  ;;  %v980_v16 = vsub.f32 %v2626_v21, %v924_v0  ;;  %v1082_v15 = vadd.f32 %v2752_v54, %v1081_v40 }
 0x31d   : > { %v2761_v1 = vpop.eup %1921  ;;  %1935 = vpow2.f32 %v1027_v63 }
 0x31e   : > { %v2763_v2 = vpop.eup %1923  ;;  %v1029_v7 = vmul.f32 1.442695, %v979_v41  ;;  %v1031_v8 = vmul.f32 1.442695, %v980_v16  ;;  %1083 = vadd.xlane.f32.xlu0 %v1082_v15 }
 0x31f   : > { %v928_v11 = vpop.xlane.xlu1 %927  ;;  %v1085_v44 = vsel %vm435_vm0, %v2763_v2, 0.0 }
 0x320   : > { %1937 = vpow2.f32 %v1029_v7  ;;  %v981_v43 = vsub.f32 %v2638_v28, %v928_v11  ;;  %v982_v22 = vsub.f32 %v2635_v27, %v928_v11  ;;  %v1086_v21 = vadd.f32 %v2761_v1, %v1085_v44 }
 0x321   : > { %v2770_v12 = vpop.eup %1925  ;;  %1939 = vpow2.f32 %v1031_v8 }
 0x322   : > { %v2772_v17 = vpop.eup %1927  ;;  %v1033_v50 = vmul.f32 1.442695, %v981_v43  ;;  %v1035_v49 = vmul.f32 1.442695, %v982_v22  ;;  %1087 = vadd.xlane.f32.xlu1 %v1086_v21  ;;  %v1906_v22 = vld [vmem:[%s2499_s1 + $0x4] ss:$8 sps:$4 sm:$0xff]  }
 0x323   : > { %v932_v18 = vpop.xlane.xlu1 %931  ;;  %v1089_v19 = vsel %vm435_vm0, %v2772_v17, 0.0  ;;  %1789 = vmatprep.subr.msk.bf16.mxu0 %vm435_vm0, %v1906_v22 }
 0x324   : > { %1941 = vpow2.f32 %v1033_v50  ;;  %v983_v20 = vsub.f32 %v2647_v34, %v932_v18  ;;  %v984_v28 = vsub.f32 %v2644_v33, %v932_v18  ;;  %v1090_v27 = vadd.f32 %v2770_v12, %v1089_v19  ;;  %v1908_v50 = vld [vmem:[%s2499_s1] ss:$8 sps:$4 sm:$0xff]  }
 0x325   : > { %v2779_v56 = vpop.eup %1929  ;;  %1943 = vpow2.f32 %v1035_v49  ;;  %1363 = vmatpush1.bf16.xpose.msra.mxu0 %v1908_v50 }
 0x326   : > { %v2781_v26 = vpop.eup %1931  ;;  %v1037_v29 = vmul.f32 1.442695, %v983_v20  ;;  %v1039_v30 = vmul.f32 1.442695, %v984_v28  ;;  %1091 = vadd.xlane.f32.xlu0 %v1090_v27 }
 0x327   : > { %v936_v61 = vpop.xlane.xlu1 %935  ;;  %v1093_v62 = vsel %vm435_vm0, %v2781_v26, 0.0 }
 0x328   : > { %1945 = vpow2.f32 %v1037_v29  ;;  %v985_v35 = vsub.f32 %v2656_v42, %v936_v61  ;;  %v986_v34 = vsub.f32 %v2653_v39, %v936_v61  ;;  %v1094_v33 = vadd.f32 %v2779_v56, %v1093_v62 }
 0x329   : > { %v2788_v4 = vpop.eup %1933  ;;  %1947 = vpow2.f32 %v1039_v30 }
 0x32a   : > { %v2790_v37 = vpop.eup %1935  ;;  %v1041_v38 = vmul.f32 1.442695, %v985_v35  ;;  %v1043_v47 = vmul.f32 1.442695, %v986_v34  ;;  %1095 = vadd.xlane.f32.xlu1 %v1094_v33 }
 0x32b   : > { %v940_v48 = vpop.xlane.xlu1 %939  ;;  %v1097_v53 = vsel %vm435_vm0, %v2790_v37, 0.0 }
 0x32c   : > { %1949 = vpow2.f32 %v1041_v38  ;;  %v987_v10 = vsub.f32 %v2665_v52, %v940_v48  ;;  %v988_v42 = vsub.f32 %v2662_v51, %v940_v48  ;;  %v1098_v39 = vadd.f32 %v2788_v4, %v1097_v53 }
 0x32d   : > { %v2797_v9 = vpop.eup %1937  ;;  %1951 = vpow2.f32 %v1043_v47 }
 0x32e   : > { %v2799_v58 = vpop.eup %1939  ;;  %v1045_v63 = vmul.f32 1.442695, %v987_v10  ;;  %v1047_v0 = vmul.f32 1.442695, %v988_v42  ;;  %1099 = vadd.xlane.f32.xlu0 %v1098_v39 }
 0x32f   : > { %v944_v40 = vpop.xlane.xlu1 %943  ;;  %v1101_v41 = vsel %vm435_vm0, %v2799_v58, 0.0 }
 0x330   : > { %1953 = vpow2.f32 %v1045_v63  ;;  %v989_v52 = vsub.f32 %v2674_v60, %v944_v40  ;;  %v990_v51 = vsub.f32 %v2671_v59, %v944_v40  ;;  %v1102_v16 = vadd.f32 %v2797_v9, %v1101_v41 }
 0x331   : > { %v2806_v15 = vpop.eup %1941  ;;  %1955 = vpow2.f32 %v1047_v0 }
 0x332   : > { %v2808_v7 = vpop.eup %1943  ;;  %v1049_v8 = vmul.f32 1.442695, %v989_v52  ;;  %v1051_v11 = vmul.f32 1.442695, %v990_v51  ;;  %1103 = vadd.xlane.f32.xlu1 %v1102_v16 }
 0x333   : > { %v948_v44 = vpop.xlane.xlu1 %947  ;;  %v1105_v43 = vsel %vm435_vm0, %v2808_v7, 0.0 }
 0x334   : > { %1957 = vpow2.f32 %v1049_v8  ;;  %v991_v60 = vsub.f32 %v2683_v6, %v948_v44  ;;  %v992_v59 = vsub.f32 %v2680_v5, %v948_v44  ;;  %v1106_v21 = vadd.f32 %v2806_v15, %v1105_v43 }
 0x335   : > { %v2817_v49 = vpop.eup %1945  ;;  %1959 = vpow2.f32 %v1051_v11 }
 0x336   : > { %v2820_v18 = vpop.eup %1947  ;;  %v1053_v19 = vmul.f32 1.442695, %v991_v60  ;;  %v1055_v20 = vmul.f32 1.442695, %v992_v59  ;;  %1107 = vadd.xlane.f32.xlu0 %v1106_v21 }
 0x337   : > { %v952_v28 = vpop.xlane.xlu1 %951  ;;  %v1109_v6 = vsel %vm435_vm0, %v2820_v18, 0.0 }
 0x338   : > { %1961 = vpow2.f32 %v1053_v19  ;;  %v993_v5 = vsub.f32 %v2692_v14, %v952_v28  ;;  %v994_v27 = vsub.f32 %v2689_v13, %v952_v28  ;;  %v1110_v29 = vadd.f32 %v2817_v49, %v1109_v6 }
 0x339   : > { %v2827_v30 = vpop.eup %1949  ;;  %1963 = vpow2.f32 %v1055_v20 }
 0x33a   : > { %v2829_v61 = vpop.eup %1951  ;;  %v1057_v62 = vmul.f32 1.442695, %v993_v5  ;;  %v1059_v35 = vmul.f32 1.442695, %v994_v27  ;;  %1111 = vadd.xlane.f32.xlu1 %v1110_v29 }
 0x33b   : > { %v956_v34 = vpop.xlane.xlu1 %955  ;;  %v1113_v33 = vsel %vm435_vm0, %v2829_v61, 0.0 }
 0x33c   : > { %1965 = vpow2.f32 %v1057_v62  ;;  %v995_v38 = vsub.f32 %v2701_v24, %v956_v34  ;;  %v996_v14 = vsub.f32 %v2698_v23, %v956_v34  ;;  %v1114_v13 = vadd.f32 %v2827_v30, %v1113_v33 }
 0x33d   : > { %v2836_v47 = vpop.eup %1953  ;;  %1967 = vpow2.f32 %v1059_v35 }
 0x33e   : > { %v2838_v48 = vpop.eup %1955  ;;  %v1061_v53 = vmul.f32 1.442695, %v995_v38  ;;  %v1063_v10 = vmul.f32 1.442695, %v996_v14  ;;  %1115 = vadd.xlane.f32.xlu0 %v1114_v13 }
 0x33f   : > { %v960_v42 = vpop.xlane.xlu1 %959  ;;  %v1117_v39 = vsel %vm435_vm0, %v2838_v48, 0.0 }
 0x340   : > { %1969 = vpow2.f32 %v1061_v53  ;;  %v997_v63 = vsub.f32 %v2710_v32, %v960_v42  ;;  %v998_v24 = vsub.f32 %v2707_v31, %v960_v42  ;;  %v1118_v23 = vadd.f32 %v2836_v47, %v1117_v39 }
 0x341   : > { %v2845_v0 = vpop.eup %1957  ;;  %1971 = vpow2.f32 %v1063_v10 }
 0x342   : > { %v2847_v40 = vpop.eup %1959  ;;  %v1065_v41 = vmul.f32 1.442695, %v997_v63  ;;  %v1067_v52 = vmul.f32 1.442695, %v998_v24  ;;  %1119 = vadd.xlane.f32.xlu1 %v1118_v23 }
 0x343   : > { %v964_v51 = vpop.xlane.xlu1 %963  ;;  %v1121_v16 = vsel %vm435_vm0, %v2847_v40, 0.0 }
 0x344   : > { %1973 = vpow2.f32 %v1065_v41  ;;  %v999_v8 = vsub.f32 %v2719_v46, %v964_v51  ;;  %v1000_v32 = vsub.f32 %v2716_v45, %v964_v51  ;;  %v1122_v31 = vadd.f32 %v2845_v0, %v1121_v16 }
 0x345   : > { %v2854_v11 = vpop.eup %1961  ;;  %1975 = vpow2.f32 %v1067_v52 }
 0x346   : > { %v2856_v44 = vpop.eup %1963  ;;  %v1069_v43 = vmul.f32 1.442695, %v999_v8  ;;  %v1071_v22 = vmul.f32 1.442695, %v1000_v32  ;;  %1123 = vadd.xlane.f32.xlu0 %v1122_v31 }
 0x347   : > { %v1125_v60 = vsel %vm435_vm0, %v2856_v44, 0.0 }
 0x348   : > { %1977 = vpow2.f32 %v1069_v43  ;;  %v1126_v59 = vadd.f32 %v2854_v11, %v1125_v60 }
 0x349   : > { %v2861_v21 = vpop.eup %1965  ;;  %1979 = vpow2.f32 %v1071_v22 }
 0x34a   : > { %v2863_v45 = vpop.eup %1967  ;;  %1127 = vadd.xlane.f32.xlu1 %v1126_v59 }
 0x34b   : > { %v1129_v46 = vsel %vm435_vm0, %v2863_v45, 0.0 }
 0x34c   : > { %v1130_v50 = vadd.f32 %v2861_v21, %v1129_v46 }
 0x34d   : > { %v2868_v19 = vpop.eup %1969 }
 0x34e   : > { %v2870_v20 = vpop.eup %1971  ;;  %1131 = vadd.xlane.f32.xlu0 %v1130_v50 }
 0x34f   : > { %v1133_v28 = vsel %vm435_vm0, %v2870_v20, 0.0 }
 0x350   : > { %v1134_v6 = vadd.f32 %v2868_v19, %v1133_v28 }
 0x351   : > { %v2875_v5 = vpop.eup %1973 }
 0x352   : > { %v2877_v27 = vpop.eup %1975  ;;  %1135 = vadd.xlane.f32.xlu1 %v1134_v6 }
 0x353   : > { %v1137_v29 = vsel %vm435_vm0, %v2877_v27, 0.0 }
 0x354   : > { %v1138_v62 = vadd.f32 %v2875_v5, %v1137_v29 }
 0x355   : > { %v2882_v35 = vpop.eup %1977 }
 0x356   : > { %v2884_v34 = vpop.eup %1979  ;;  %1139 = vadd.xlane.f32.xlu0 %v1138_v62 }
 0x357   : > { %v1141_v33 = vsel %vm435_vm0, %v2884_v34, 0.0 }
 0x358   : > { %v1142_v38 = vadd.f32 %v2882_v35, %v1141_v33 }
 0x35a   : > { %1143 = vadd.xlane.f32.xlu1 %v1142_v38 }
 0x39f   : > { %v1076_v14 = vpop.xlane.xlu0 %1075 }
 0x3a0   : > { %1981 = vrcp.f32 %v1076_v14 }
 0x3a3   : > { %v1080_v13 = vpop.xlane.xlu1 %1079 }
 0x3a4   : > { %1983 = vrcp.f32 %v1080_v13 }
 0x3a7   : > { %v1084_v53 = vpop.xlane.xlu0 %1083 }
 0x3a8   : > { %1985 = vrcp.f32 %v1084_v53 }
 0x3ab   : > { %v1088_v10 = vpop.xlane.xlu1 %1087 }
 0x3ac   : > { %1987 = vrcp.f32 %v1088_v10 }
 0x3ad   : > { %v1982_v42 = vpop.eup %1981 }
 0x3ae   : > { %v1163_v39 = vmul.f32 %v1982_v42, %v1076_v14 }
 0x3af   : > { %v1092_v63 = vpop.xlane.xlu0 %1091 }
 0x3b0   : > { %v1181_v24 = vsub.f32 2.0, %v1163_v39  ;;  %1989 = vrcp.f32 %v1092_v63 }
 0x3b1   : > { %v1984_v23 = vpop.eup %1983 }
 0x3b2   : > { %v1199_v41 = vmul.f32 %v1982_v42, %v1181_v24  ;;  %v1164_v52 = vmul.f32 %v1984_v23, %v1080_v13 }
 0x3b3   : > { %v1096_v51 = vpop.xlane.xlu1 %1095 }
 0x3b4   : > { %v1217_v16 = vmul.f32 %v2734_v25, %v1199_v41  ;;  %v1218_v8 = vmul.f32 %v2736_v55, %v1199_v41  ;;  %v1182_v32 = vsub.f32 2.0, %v1164_v52  ;;  %1991 = vrcp.f32 %v1096_v51 }
 0x3b5   : > { %v1986_v31 = vpop.eup %1985 }
 0x3b6   : > { %1253 = vst [vmem:[%s2892_s9] sm:$0xff] %v1217_v16  ;;  %1254 = vst.msk [vmem:[%s2892_s9 + $0x8] sm:$0xff] %vm435_vm0, %v1218_v8  ;;  %v1200_v43 = vmul.f32 %v1984_v23, %v1182_v32  ;;  %v1165_v22 = vmul.f32 %v1986_v31, %v1084_v53 }
 0x3b7   : > { %v1100_v60 = vpop.xlane.xlu0 %1099 }
 0x3b8   : > { %v1219_v59 = vmul.f32 %v2743_v36, %v1200_v43  ;;  %v1220_v25 = vmul.f32 %v2745_v3, %v1200_v43  ;;  %v1183_v55 = vsub.f32 2.0, %v1165_v22  ;;  %1993 = vrcp.f32 %v1100_v60 }
 0x3b9   : > { %v1988_v46 = vpop.eup %1987 }
 0x3ba   : > { %1255 = vst [vmem:[%s2892_s9 + $0x10] sm:$0xff] %v1219_v59  ;;  %1256 = vst.msk [vmem:[%s2892_s9 + $0x18] sm:$0xff] %vm435_vm0, %v1220_v25  ;;  %v1289_v50 = vpack.c.bf16 %v1219_v59, %v1217_v16  ;;  %v1201_v28 = vmul.f32 %v1986_v31, %v1183_v55  ;;  %v1166_v6 = vmul.f32 %v1988_v46, %v1088_v10 }
 0x3bb   : > { %v1290_v29 = vpack.c.bf16 %v1220_v25, %v1218_v8  ;;  %v1104_v62 = vpop.xlane.xlu1 %1103 }
 0x3bc   : > { %v1222_v33 = vmul.f32 %v2754_v57, %v1201_v28  ;;  %v1184_v38 = vsub.f32 2.0, %v1166_v6  ;;  %1995 = vrcp.f32 %v1104_v62  ;;  %v1221_v36 = vmul.f32 %v2752_v54, %v1201_v28 }
 0x3bd   : > { %1790 = vmatprep.mubr.msk.bf16.mxu0 %vm435_vm0, %v1290_v29  ;;  %v1990_v3 = vpop.eup %1989 }
 0x3be   : > { %1381 = vmatmul.mubr.bf16.vlgmr.msra.gmra.mxu0 %v1289_v50  ;;  %1258 = vst.msk [vmem:[%s2892_s9 + $0x28] sm:$0xff] %vm435_vm0, %v1222_v33  ;;  %v1202_v14 = vmul.f32 %v1988_v46, %v1184_v38  ;;  %v1167_v13 = vmul.f32 %v1990_v3, %v1092_v63  ;;  %1257 = vst [vmem:[%s2892_s9 + $0x20] sm:$0xff] %v1221_v36 }
 0x3bf   : > { %v1108_v53 = vpop.xlane.xlu0 %1107 }
 0x3c0   : > { %v1224_v10 = vmul.f32 %v2763_v2, %v1202_v14  ;;  %v1185_v42 = vsub.f32 2.0, %v1167_v13  ;;  %1997 = vrcp.f32 %v1108_v53  ;;  %v1223_v57 = vmul.f32 %v2761_v1, %v1202_v14 }
 0x3c1   : > { %v1992_v39 = vpop.eup %1991 }
 0x3c2   : > { %1260 = vst.msk [vmem:[%s2892_s9 + $0x38] sm:$0xff] %vm435_vm0, %v1224_v10  ;;  %v1203_v54 = vmul.f32 %v1990_v3, %v1185_v42  ;;  %v1168_v24 = vmul.f32 %v1992_v39, %v1096_v51  ;;  %v1292_v23 = vpack.c.bf16 %v1224_v10, %v1222_v33  ;;  %1259 = vst [vmem:[%s2892_s9 + $0x30] sm:$0xff] %v1223_v57 }
 0x3c3   : > { %v1291_v41 = vpack.c.bf16 %v1223_v57, %v1221_v36  ;;  %v1112_v52 = vpop.xlane.xlu1 %1111 }
 0x3c4   : > { %v1226_v63 = vmul.f32 %v2772_v17, %v1203_v54  ;;  %v1186_v16 = vsub.f32 2.0, %v1168_v24  ;;  %1999 = vrcp.f32 %v1112_v52  ;;  %1791 = vmatprep.mubr.msk.bf16.mxu0 %vm435_vm0, %v1292_v23  ;;  %v1225_v1 = vmul.f32 %v2770_v12, %v1203_v54 }
 0x3c5   : > { %v1994_v2 = vpop.eup %1993 }
 0x3c6   : > { %1389 = vmatmul.mubr.bf16.gmra.mxu0 %v1291_v41  ;;  %1262 = vst.msk [vmem:[%s2892_s9 + $0x48] sm:$0xff] %vm435_vm0, %v1226_v63  ;;  %v1204_v8 = vmul.f32 %v1992_v39, %v1186_v16  ;;  %v1169_v51 = vmul.f32 %v1994_v2, %v1100_v60  ;;  %1261 = vst [vmem:[%s2892_s9 + $0x40] sm:$0xff] %v1225_v1 }
 0x3c7   : > { %v1116_v32 = vpop.xlane.xlu0 %1115 }
 0x3c8   : > { %v1228_v31 = vmul.f32 %v2781_v26, %v1204_v8  ;;  %v1187_v43 = vsub.f32 2.0, %v1169_v51  ;;  %2001 = vrcp.f32 %v1116_v32  ;;  %v1227_v17 = vmul.f32 %v2779_v56, %v1204_v8 }
 0x3c9   : > { %v1996_v22 = vpop.eup %1995 }
 0x3ca   : > { %1264 = vst.msk [vmem:[%s2892_s9 + $0x58] sm:$0xff] %vm435_vm0, %v1228_v31  ;;  %v1205_v12 = vmul.f32 %v1994_v2, %v1187_v43  ;;  %v1170_v59 = vmul.f32 %v1996_v22, %v1104_v62  ;;  %v1294_v25 = vpack.c.bf16 %v1228_v31, %v1226_v63  ;;  %1263 = vst [vmem:[%s2892_s9 + $0x50] sm:$0xff] %v1227_v17 }
 0x3cb   : > { %v1293_v55 = vpack.c.bf16 %v1227_v17, %v1225_v1  ;;  %v1120_v46 = vpop.xlane.xlu1 %1119 }
 0x3cc   : > { %v1230_v60 = vmul.f32 %v2790_v37, %v1205_v12  ;;  %v1188_v50 = vsub.f32 2.0, %v1170_v59  ;;  %2003 = vrcp.f32 %v1120_v46  ;;  %1792 = vmatprep.mubr.msk.bf16.mxu0 %vm435_vm0, %v1294_v25  ;;  %v1229_v56 = vmul.f32 %v2788_v4, %v1205_v12 }
 0x3cd   : > { %v1998_v26 = vpop.eup %1997 }
 0x3ce   : > { %1397 = vmatmul.mubr.bf16.gmra.mxu0 %v1293_v55  ;;  %1266 = vst.msk [vmem:[%s2892_s9 + $0x68] sm:$0xff] %vm435_vm0, %v1230_v60  ;;  %v1206_v28 = vmul.f32 %v1996_v22, %v1188_v50  ;;  %v1171_v6 = vmul.f32 %v1998_v26, %v1108_v53  ;;  %1265 = vst [vmem:[%s2892_s9 + $0x60] sm:$0xff] %v1229_v56 }
 0x3cf   : > { %v1124_v29 = vpop.xlane.xlu0 %1123 }
 0x3d0   : > { %v1232_v62 = vmul.f32 %v2799_v58, %v1206_v28  ;;  %v1189_v33 = vsub.f32 2.0, %v1171_v6  ;;  %2005 = vrcp.f32 %v1124_v29  ;;  %v1231_v37 = vmul.f32 %v2797_v9, %v1206_v28 }
 0x3d1   : > { %v2000_v38 = vpop.eup %1999 }
 0x3d2   : > { %1268 = vst.msk [vmem:[%s2892_s9 + $0x78] sm:$0xff] %vm435_vm0, %v1232_v62  ;;  %v1207_v4 = vmul.f32 %v1998_v26, %v1189_v33  ;;  %v1172_v36 = vmul.f32 %v2000_v38, %v1112_v52  ;;  %v1296_v3 = vpack.c.bf16 %v1232_v62, %v1230_v60  ;;  %1267 = vst [vmem:[%s2892_s9 + $0x70] sm:$0xff] %v1231_v37 }
 0x3d3   : > { %v1295_v14 = vpack.c.bf16 %v1231_v37, %v1229_v56  ;;  %v1128_v13 = vpop.xlane.xlu1 %1127 }
 0x3d4   : > { %v1234_v53 = vmul.f32 %v2808_v7, %v1207_v4  ;;  %v1190_v10 = vsub.f32 2.0, %v1172_v36  ;;  %2007 = vrcp.f32 %v1128_v13  ;;  %1793 = vmatprep.mubr.msk.bf16.mxu0 %vm435_vm0, %v1296_v3  ;;  %v1233_v9 = vmul.f32 %v2806_v15, %v1207_v4 }
 0x3d5   : > { %v2002_v58 = vpop.eup %2001 }
 0x3d6   : > { %1405 = vmatmul.mubr.bf16.gmra.mxu0 %v1295_v14  ;;  %1270 = vst.msk [vmem:[%s2892_s9 + $0x88] sm:$0xff] %vm435_vm0, %v1234_v53  ;;  %v1208_v42 = vmul.f32 %v2000_v38, %v1190_v10  ;;  %v1173_v57 = vmul.f32 %v2002_v58, %v1116_v32  ;;  %1269 = vst [vmem:[%s2892_s9 + $0x80] sm:$0xff] %v1233_v9 }
 0x3d7   : > { %v1132_v39 = vpop.xlane.xlu0 %1131 }
 0x3d8   : > { %v1236_v54 = vmul.f32 %v2820_v18, %v1208_v42  ;;  %v1191_v24 = vsub.f32 2.0, %v1173_v57  ;;  %2009 = vrcp.f32 %v1132_v39  ;;  %v1235_v7 = vmul.f32 %v2817_v49, %v1208_v42 }
 0x3d9   : > { %v2004_v23 = vpop.eup %2003 }
 0x3da   : > { %1272 = vst.msk [vmem:[%s2892_s9 + $0x98] sm:$0xff] %vm435_vm0, %v1236_v54  ;;  %v1209_v15 = vmul.f32 %v2002_v58, %v1191_v24  ;;  %v1174_v41 = vmul.f32 %v2004_v23, %v1120_v46  ;;  %v1298_v52 = vpack.c.bf16 %v1236_v54, %v1234_v53  ;;  %1271 = vst [vmem:[%s2892_s9 + $0x90] sm:$0xff] %v1235_v7 }
 0x3db   : > { %v1297_v63 = vpack.c.bf16 %v1235_v7, %v1233_v9  ;;  %v1136_v16 = vpop.xlane.xlu1 %1135 }
 0x3dc   : > { %v1238_v1 = vmul.f32 %v2829_v61, %v1209_v15  ;;  %v1192_v2 = vsub.f32 2.0, %v1174_v41  ;;  %2011 = vrcp.f32 %v1136_v16  ;;  %1794 = vmatprep.mubr.msk.bf16.mxu0 %vm435_vm0, %v1298_v52  ;;  %v1237_v49 = vmul.f32 %v2827_v30, %v1209_v15 }
 0x3dd   : > { %v2006_v18 = vpop.eup %2005 }
 0x3de   : > { %1413 = vmatmul.mubr.bf16.gmra.mxu0 %v1297_v63  ;;  %1274 = vst.msk [vmem:[%s2892_s9 + $0xa8] sm:$0xff] %vm435_vm0, %v1238_v1  ;;  %v1210_v8 = vmul.f32 %v2004_v23, %v1192_v2  ;;  %v1175_v51 = vmul.f32 %v2006_v18, %v1124_v29  ;;  %1273 = vst [vmem:[%s2892_s9 + $0xa0] sm:$0xff] %v1237_v49 }
 0x3df   : > { %v1140_v32 = vpop.xlane.xlu0 %1139 }
 0x3e0   : > { %v1240_v31 = vmul.f32 %v2838_v48, %v1210_v8  ;;  %v1193_v43 = vsub.f32 2.0, %v1175_v51  ;;  %2013 = vrcp.f32 %v1140_v32  ;;  %v1239_v61 = vmul.f32 %v2836_v47, %v1210_v8 }
 0x3e1   : > { %v2008_v17 = vpop.eup %2007 }
 0x3e2   : > { %1276 = vst.msk [vmem:[%s2892_s9 + $0xb8] sm:$0xff] %vm435_vm0, %v1240_v31  ;;  %v1211_v30 = vmul.f32 %v2006_v18, %v1193_v43  ;;  %v1176_v22 = vmul.f32 %v2008_v17, %v1128_v13  ;;  %v1300_v12 = vpack.c.bf16 %v1240_v31, %v1238_v1  ;;  %1275 = vst [vmem:[%s2892_s9 + $0xb0] sm:$0xff] %v1239_v61 }
 0x3e3   : > { %v1299_v59 = vpack.c.bf16 %v1239_v61, %v1237_v49  ;;  %v1144_v25 = vpop.xlane.xlu1 %1143 }
 0x3e4   : > { %v1242_v55 = vmul.f32 %v2847_v40, %v1211_v30  ;;  %v1194_v46 = vsub.f32 2.0, %v1176_v22  ;;  %2015 = vrcp.f32 %v1144_v25  ;;  %1795 = vmatprep.mubr.msk.bf16.mxu0 %vm435_vm0, %v1300_v12  ;;  %v1241_v47 = vmul.f32 %v2845_v0, %v1211_v30 }
 0x3e5   : > { %v2010_v48 = vpop.eup %2009 }
 0x3e6   : > { %1421 = vmatmul.mubr.bf16.gmra.mxu0 %v1299_v59  ;;  %1278 = vst.msk [vmem:[%s2892_s9 + $0xc8] sm:$0xff] %vm435_vm0, %v1242_v55  ;;  %v1212_v60 = vmul.f32 %v2008_v17, %v1194_v46  ;;  %v1177_v50 = vmul.f32 %v2010_v48, %v1132_v39  ;;  %1277 = vst [vmem:[%s2892_s9 + $0xc0] sm:$0xff] %v1241_v47 }
 0x3e8   : > { %v1244_v56 = vmul.f32 %v2856_v44, %v1212_v60  ;;  %v1195_v26 = vsub.f32 2.0, %v1177_v50  ;;  %v1243_v40 = vmul.f32 %v2854_v11, %v1212_v60 }
 0x3e9   : > { %v2012_v28 = vpop.eup %2011 }
 0x3ea   : > { %1280 = vst.msk [vmem:[%s2892_s9 + $0xd8] sm:$0xff] %vm435_vm0, %v1244_v56  ;;  %v1213_v6 = vmul.f32 %v2010_v48, %v1195_v26  ;;  %v1178_v29 = vmul.f32 %v2012_v28, %v1136_v16  ;;  %v1302_v0 = vpack.c.bf16 %v1244_v56, %v1242_v55  ;;  %1279 = vst [vmem:[%s2892_s9 + $0xd0] sm:$0xff] %v1243_v40 }
 0x3eb   : > { %v1301_v62 = vpack.c.bf16 %v1243_v40, %v1241_v47 }
 0x3ec   : > { %v1246_v33 = vmul.f32 %v2863_v45, %v1213_v6  ;;  %v1196_v37 = vsub.f32 2.0, %v1178_v29  ;;  %1796 = vmatprep.mubr.msk.bf16.mxu0 %vm435_vm0, %v1302_v0  ;;  %v1245_v44 = vmul.f32 %v2861_v21, %v1213_v6 }
 0x3ed   : > { %v2014_v38 = vpop.eup %2013 }
 0x3ee   : > { %1429 = vmatmul.mubr.bf16.gmra.mxu0 %v1301_v62  ;;  %1282 = vst.msk [vmem:[%s2892_s9 + $0xe8] sm:$0xff] %vm435_vm0, %v1246_v33  ;;  %v1214_v11 = vmul.f32 %v2012_v28, %v1196_v37  ;;  %v1179_v4 = vmul.f32 %v2014_v38, %v1140_v32  ;;  %1281 = vst [vmem:[%s2892_s9 + $0xe0] sm:$0xff] %v1245_v44 }
 0x3f0   : > { %v1248_v36 = vmul.f32 %v2870_v20, %v1214_v11  ;;  %v1197_v3 = vsub.f32 2.0, %v1179_v4  ;;  %v1247_v45 = vmul.f32 %v2868_v19, %v1214_v11 }
 0x3f1   : > { %v2016_v14 = vpop.eup %2015 }
 0x3f2   : > { %1284 = vst.msk [vmem:[%s2892_s9 + $0xf8] sm:$0xff] %vm435_vm0, %v1248_v36  ;;  %v1215_v13 = vmul.f32 %v2014_v38, %v1197_v3  ;;  %v1180_v21 = vmul.f32 %v2016_v14, %v1144_v25  ;;  %v1304_v53 = vpack.c.bf16 %v1248_v36, %v1246_v33  ;;  %1283 = vst [vmem:[%s2892_s9 + $0xf0] sm:$0xff] %v1247_v45 }
 0x3f3   : > { %v1303_v10 = vpack.c.bf16 %v1247_v45, %v1245_v44 }
 0x3f4   : > { %v1250_v9 = vmul.f32 %v2877_v27, %v1215_v13  ;;  %v1198_v58 = vsub.f32 2.0, %v1180_v21  ;;  %1797 = vmatprep.mubr.msk.bf16.mxu0 %vm435_vm0, %v1304_v53  ;;  %v1249_v20 = vmul.f32 %v2875_v5, %v1215_v13 }
 0x3f6   : > { %1437 = vmatmul.mubr.bf16.gmra.mxu0 %v1303_v10  ;;  %1286 = vst.msk [vmem:[%s2892_s9 + $0x108] sm:$0xff] %vm435_vm0, %v1250_v9  ;;  %v1216_v19 = vmul.f32 %v2016_v14, %v1198_v58  ;;  %1285 = vst [vmem:[%s2892_s9 + $0x100] sm:$0xff] %v1249_v20 }
 0x3f8   : > { %v1252_v42 = vmul.f32 %v2884_v34, %v1216_v19  ;;  %v1251_v57 = vmul.f32 %v2882_v35, %v1216_v19 }
 0x3fa   : > { %1288 = vst.msk [vmem:[%s2892_s9 + $0x118] sm:$0xff] %vm435_vm0, %v1252_v42  ;;  %v1306_v39 = vpack.c.bf16 %v1252_v42, %v1250_v9  ;;  %1287 = vst [vmem:[%s2892_s9 + $0x110] sm:$0xff] %v1251_v57  ;;  %v1305_v54 = vpack.c.bf16 %v1251_v57, %v1249_v20 }
 0x3fc   : > { %1798 = vmatprep.mubr.msk.bf16.mxu0 %vm435_vm0, %v1306_v39 }
 0x3fe   : > { %1445 = vmatmul.mubr.bf16.gmra.mxu0 %v1305_v54 }
 0x47e   : > { %v1382_v27 = vpop.f32.mrf.mxu0 }
 0x47f   : > { %1454 = vxpose.xlu0.b32.start [1/16] (narrow) %v1382_v27, 16 }
 0x480   : > { %v1384_v5 = vpop.f32.mrf.mxu0 }
 0x482   : > { %v1385_v24 = vpop.f32.mrf.mxu0 }
 0x483   : > { %1455 = vxpose.xlu0.b32.cont [2/16] (narrow) %v1385_v24, 16 }
 0x484   : > { %v1387_v7 = vpop.f32.mrf.mxu0 }
 0x486   : > { %v1390_v23 = vpop.f32.mrf.mxu0 }
 0x487   : > { %1456 = vxpose.xlu0.b32.cont [3/16] (narrow) %v1390_v23, 16 }
 0x488   : > { %v1392_v15 = vpop.f32.mrf.mxu0 }
 0x48a   : > { %v1393_v34 = vpop.f32.mrf.mxu0 }
 0x48b   : > { %1457 = vxpose.xlu0.b32.cont [4/16] (narrow) %v1393_v34, 16 }
 0x48c   : > { %v1395_v35 = vpop.f32.mrf.mxu0 }
 0x48e   : > { %v1398_v41 = vpop.f32.mrf.mxu0 }
 0x48f   : > { %1458 = vxpose.xlu0.b32.cont [5/16] (narrow) %v1398_v41, 16 }
 0x490   : > { %v1400_v52 = vpop.f32.mrf.mxu0 }
 0x492   : > { %v1401_v63 = vpop.f32.mrf.mxu0 }
 0x493   : > { %1459 = vxpose.xlu0.b32.cont [6/16] (narrow) %v1401_v63, 16 }
 0x494   : > { %v1403_v16 = vpop.f32.mrf.mxu0 }
 0x496   : > { %v1406_v1 = vpop.f32.mrf.mxu0 }
 0x497   : > { %1460 = vxpose.xlu0.b32.cont [7/16] (narrow) %v1406_v1, 16 }
 0x498   : > { %v1408_v2 = vpop.f32.mrf.mxu0 }
 0x49a   : > { %v1409_v49 = vpop.f32.mrf.mxu0 }
 0x49b   : > { %1461 = vxpose.xlu0.b32.cont [8/16] (narrow) %v1409_v49, 16 }
 0x49c   : > { %v1411_v18 = vpop.f32.mrf.mxu0 }
 0x49e   : > { %v1414_v8 = vpop.f32.mrf.mxu0 }
 0x49f   : > { %1462 = vxpose.xlu0.b32.cont [9/16] (narrow) %v1414_v8, 16 }
 0x4a0   : > { %v1416_v51 = vpop.f32.mrf.mxu0 }
 0x4a2   : > { %v1417_v32 = vpop.f32.mrf.mxu0 }
 0x4a3   : > { %1463 = vxpose.xlu0.b32.cont [10/16] (narrow) %v1417_v32, 16 }
 0x4a4   : > { %v1419_v31 = vpop.f32.mrf.mxu0 }
 0x4a6   : > { %v1422_v43 = vpop.f32.mrf.mxu0 }
 0x4a7   : > { %1464 = vxpose.xlu0.b32.cont [11/16] (narrow) %v1422_v43, 16 }
 0x4a8   : > { %v1424_v61 = vpop.f32.mrf.mxu0 }
 0x4aa   : > { %v1425_v17 = vpop.f32.mrf.mxu0 }
 0x4ab   : > { %1465 = vxpose.xlu0.b32.cont [12/16] (narrow) %v1425_v17, 16 }
 0x4ac   : > { %v1427_v30 = vpop.f32.mrf.mxu0 }
 0x4ae   : > { %v1430_v22 = vpop.f32.mrf.mxu0 }
 0x4af   : > { %1466 = vxpose.xlu0.b32.cont [13/16] (narrow) %v1430_v22, 16 }
 0x4b0   : > { %v1432_v12 = vpop.f32.mrf.mxu0 }
 0x4b2   : > { %v1433_v59 = vpop.f32.mrf.mxu0 }
 0x4b3   : > { %1467 = vxpose.xlu0.b32.cont [14/16] (narrow) %v1433_v59, 16 }
 0x4b4   : > { %v1435_v25 = vpop.f32.mrf.mxu0 }
 0x4b6   : > { %v1438_v55 = vpop.f32.mrf.mxu0 }
 0x4b7   : > { %1468 = vxpose.xlu0.b32.cont [15/16] (narrow) %v1438_v55, 16 }
 0x4b8   : > { %v1440_v46 = vpop.f32.mrf.mxu0 }
 0x4ba   : > { %v1441_v47 = vpop.f32.mrf.mxu0 }
 0x4bb   : > { %1469 = vxpose.xlu0.b32.end [16/16] (narrow) %v1441_v47, 16 }
 0x4bc   : > { %v1443_v48 = vpop.f32.mrf.mxu0 }
 0x4be   : > { %v1446_v60 = vpop.f32.mrf.mxu0 }
 0x4bf   : > { %1486 = vxpose.xlu1.b32.start [1/2] (short) (narrow) %v1446_v60, 16 }
 0x4c0   : > { %v1448_v50 = vpop.f32.mrf.mxu0 }
 0x4c2   : > { %v1449_v56 = vpop.f32.mrf.mxu0 }
 0x4c3   : > { %1487 = vxpose.xlu1.b32.end [2/2] (short) (narrow) %v1449_v56, 16 }
 0x4c4   : > { %v1451_v26 = vpop.f32.mrf.mxu0 }
 0x4c5   : > { %2144 = shalt.err (!%p2141_p3)
}
 0x4c6   : > { %s2145_s21 = scalar_lea.hbm %s2996_s0, 4608  ;;  %s2149_s10 = scalar_lea.hbm %s3095_s7, 9216 }
 0x4c7   : > { %p2146_p6 = scmp.ne.s32.totalorder %s2996_s0, %s2145_s21  ;;  %p2150_p7 = scmp.lt.s32.totalorder %s2996_s0, %s3095_s7 }
 0x4c8   : > { %p2151_p2 = scmp.lt.s32.totalorder %s2149_s10, %s2145_s21 }
 0x4c9   : > { %p2147_p9 = pnand %p2146_p6, %p2402_p12 }
 0x4ca   : > { %p2152_p11 = por %p2151_p2, %p2150_p7 }
 0x4cb   : > { %p2148_p10 = pneg %p2147_p9 }
 0x4cd   : > { %p2153_p0 = pnand %p2152_p11, %p2148_p10 }
 0x4cf   : > { %2156 = shalt.err (!%p2153_p0)
}
 0x4d0   : > { %s2261_s20 = smov 256   ;;  %s2262_s18 = smov 16   ;;  %v2017_v29 = vld [vmem:[%s2492_s23] sm:$0xff]  ;;  %v2018_v37 = vld [vmem:[%s2492_s23 + $0x10] sm:$0xff]  ;;  %v2019_v4 = vld [vmem:[%s2492_s23 + $0x8] sm:$0xff] }
 0x4d1   : > { %1822 = dma.vmem_to_hbm [thread:$0]  (%p2402_p12), %s2998_s12, 4608, %s2996_s0, %s1537_s28, %s2261_s20, %s2261_s20, %s2262_s18  }
 0x4d2   : > { %s1453_s9 = sld [smem:[#allocation2]]  ;;  %s413_s25 = scalar_lea.vmem [#allocation11], %s2480_s5  ;;  %v2020_v14 = vld [vmem:[%s2492_s23 + $0x18] sm:$0xff] }
 0x4d3   : > { %s1552_s12 = sshll.u32 %s413_s25, 4  ;;  %s1808_s15 = sshll.u32 %s2241_s29, 9  ;;  %s3032_s12 = int_to_ptr.vmem [resolvable:$true] %s1552_s12 }
 0x4d4   : > { %s3038_s0 = scalar_lea.hbm %s3094_s6, %s1808_s15  ;;  %s1532_s28 = scalar_lea.sflag [#allocation5], %s2477_s3 }
 0x4d5   : > { %s2157_s24 = scalar_lea.vmem %s3032_s12, 512  ;;  %s2263_s29 = smov [#allocation11]  }
 0x4d6   : > { %p2158_p1 = scmp.ne.s32.totalorder %s3032_s12, %s2157_s24  ;;  %s2161_s8 = sshll.u32 %s2263_s29, 4  ;;  %s2162_s8 = int_to_ptr.vmem [resolvable:$false] %s2161_s8 }
 0x4d7   : > { %s2163_s11 = scalar_lea.vmem %s2162_s8, 1024  ;;  %p2164_p4 = scmp.lt.s32.totalorder %s3032_s12, %s2162_s8 }
 0x4d8   : > { %v1518_v40 = vstv %s1453_s9  ;;  %p2159_p5 = pnand %p2158_p1, %p2402_p12  ;;  %p2165_p3 = scmp.lt.s32.totalorder %s2163_s11, %s2157_s24 }
 0x4da   : > { %p2160_p8 = pneg %p2159_p5  ;;  %p2166_p6 = por %p2165_p3, %p2164_p4 }
 0x4dc   : > { %p2167_p9 = pnand %p2166_p6, %p2160_p8 }
 0x4fb   : > { %v1470_v28 = vpop.trf.xlu0 }
 0x4fc   : > { %v1519_v6 = vmul.f32 %v1518_v40, %v1470_v28 }
 0x4fe   : > { %v1523_v0 = vadd.f32 %v2017_v29, %v1519_v6 }
 0x4ff   : > { %v1471_v62 = vpop.trf.xlu0 }
 0x500   : > { %1527 = vst [vmem:[%s413_s25] sm:$0xff] %v1523_v0  ;;  %v1521_v33 = vmul.f32 %v1518_v40, %v1471_v62 }
 0x502   : > { %v1525_v44 = vadd.f32 %v2018_v37, %v1521_v33 }
 0x504   : > { %1529 = vst [vmem:[%s413_s25 + $0x10] sm:$0xff] %v1525_v44 }
 0x53b   : > { %v1502_v38 = vpop.trf.xlu1 }
 0x53c   : > { %v1520_v11 = vmul.f32 %v1518_v40, %v1502_v38 }
 0x53e   : > { %v1524_v36 = vadd.f32 %v2019_v4, %v1520_v11 }
 0x53f   : > { %v1503_v3 = vpop.trf.xlu1 }
 0x540   : > { %1528 = vst.msk [vmem:[%s413_s25 + $0x8] sm:$0xff] %vm435_vm0, %v1524_v36  ;;  %v1522_v45 = vmul.f32 %v1518_v40, %v1503_v3 }
 0x542   : > { %v1526_v13 = vadd.f32 %v2020_v14, %v1522_v45 }
 0x544   : > { %1530 = vst.msk [vmem:[%s413_s25 + $0x18] sm:$0xff] %vm435_vm0, %v1526_v13 }
 0x545   : > { %2170 = shalt.err (!%p2167_p9)
}
 0x546   : > { %s2171_s23 = scalar_lea.hbm %s3038_s0, 512  ;;  %s2175_s21 = scalar_lea.hbm %s3094_s6, 1024 }
 0x547   : > { %p2172_p10 = scmp.ne.s32.totalorder %s3038_s0, %s2171_s23  ;;  %p2176_p11 = scmp.lt.s32.totalorder %s3038_s0, %s3094_s6 }
 0x548   : > { %p2177_p0 = scmp.lt.s32.totalorder %s2175_s21, %s2171_s23 }
 0x549   : > { %p2173_p7 = pnand %p2172_p10, %p2402_p12 }
 0x54a   : > { %p2178_p1 = por %p2177_p0, %p2176_p11 }
 0x54b   : > { %p2174_p2 = pneg %p2173_p7 }
 0x54d   : > { %p2179_p5 = pnand %p2178_p1, %p2174_p2 }
 0x54f   : > { %2182 = shalt.err (!%p2179_p5)
}
 0x550   : > { %1821 = dma.vmem_to_hbm [thread:$0]  (%p2402_p12), %s3032_s12, 512, %s3038_s0, %s1532_s28, %s2261_s20, %s2261_s20, %s2262_s18  }
 0x551 PF: > { %s3134_s1 = sld [smem:[#allocation20_spill]]  ;;  %s1586_s17 = sand.u32 1, %s2229_s26  }
 0x552   : > { %s1587_s9 = scalar_lea.sflag [#allocation5], %s1586_s17 }
 0x557   : > { %p3135_p8 = scmp.ge.s32.totalorder %s3134_s1, 2 }
 0x559   : > { %p1840_p4 = pnand %p3135_p8, %p2406_p13 }
 0x55b   : > { %p1841_p3 = pneg %p1840_p4 }
 0x55d   : > { %2220 = dma.done.wait (%p1841_p3), %s1587_s9, 512  }
 0x55e   : > { %2222 = vsyncadd (%p1841_p3), %s1587_s9, 4294966784  ;;  %s1596_s25 = scalar_lea.sflag [#allocation13], %s1586_s17 }
 0x55f   : > { %2224 = dma.done.wait (%p1841_p3), %s1596_s25, 4608  }
 0x560   : > { %2226 = vsyncadd (%p1841_p3), %s1596_s25, 4294962688  ;;  %s32_s5 = sadd.s32 1, %s3134_s1   ;;  %s3136_s19 = sld [smem:[#allocation19_spill]] }
 0x561   : > { %p29_p6 = scmp.ge.s32.totalorder %s32_s5, 4   ;;  %s3137_s28 = sld [smem:[#allocation22_spill]] }
 0x562   : > { %s3138_s20 = sld [smem:[#allocation21_spill]]  ;;  %s3139_s26 = smov %s2233_s27 }
 0x563   : > { %s3141_s29 = smov %s2245_s30 }
 0x564   :  { %31 = sbr.rel (!%p29_p6) target bundleno = 16 (0x10), region = 134 }
 0x566   : > { %s3140_s27 = smov %s3136_s19 }
 0x568   : > { %s3142_s30 = smov %s3138_s20 }
 0x569   :  { %1601 = vsyncpa [#allocation4], 1 }
 0x56a   :  { %1603 = vsyncpa [#allocation4 + $0x1], 1 }
 0x56b   :  { %1604 = vsyncpa [#allocation7], 1 }
 0x56c   :  { %1606 = vsyncpa [#allocation7 + $0x1], 1 }
 0x56d   :  { %1607 = vsyncpa [#allocation10], 1 }
 0x56e   :  { %1608 = vsyncpa [#allocation5], 1 }
 0x56f   :  { %1610 = vsyncpa [#allocation5 + $0x1], 1 }
 0x570   :  { %1611 = vsyncpa [#allocation13], 1 }
 0x571   :  { %1613 = vsyncpa [#allocation13 + $0x1], 1 }

</bundles_post_ra>
